<compile_context>
chip_gen: v7x
topology: tpu7x:2x2x1
jax: 0.10.0
libtpu: 0.0.40
codegen_flags: <defaults>
</compile_context>

<pallas_src>
import math
import functools

import jax
import jax.numpy as jnp
from jax import lax
from jax.experimental import pallas as pl
from jax.experimental.pallas import tpu as pltpu

NEG_INF = -1e9


def _round_up(x, m):
    return ((x + m - 1) // m) * m


# ----------------------------------------------------------------------------
# Pallas kernel: one (batch, head) pair per grid step.
# Head axis is the reduction axis for the fused output projection.
# ----------------------------------------------------------------------------
def _random_attention_kernel(x_ref, wq_ref, bq_ref, wk_ref, bk_ref,
                             wv_ref, bv_ref, wo_ref, bo_ref, bias_ref,
                             out_ref, probs_ref, acc_ref, *, scale):
    h = pl.program_id(1)

    @pl.when(h == 0)
    def _():
        acc_ref[...] = jnp.zeros_like(acc_ref)

    x = x_ref[0]                                             # (Sp, H) bf16

    # Per-head projections; per-head weight tiles come in lane-aligned via DMA.
    q = jnp.dot(x, wq_ref[0], preferred_element_type=jnp.float32) + bq_ref[0]
    k = jnp.dot(x, wk_ref[0], preferred_element_type=jnp.float32) + bk_ref[0]
    v = jnp.dot(x, wv_ref[0], preferred_element_type=jnp.float32) + bv_ref[0]
    q = q * scale                                            # (Sp, dh) f32

    # scores = q @ k^T via contraction on the last dims (no materialized transpose)
    scores = lax.dot_general(q.astype(jnp.bfloat16), k.astype(jnp.bfloat16),
                             (((1,), (1,)), ((), ())),
                             preferred_element_type=jnp.float32)
    scores = scores + bias_ref[...]                          # additive mask (0 / -1e9)

    # numerically-stable softmax; divide goes to EUP via approx reciprocal
    m = jnp.max(scores, axis=-1, keepdims=True)
    e = jnp.exp(scores - m)
    p = e * pl.reciprocal(jnp.sum(e, axis=-1, keepdims=True), approx=True)

    # lane-dense (Sp, Sp) slab store of this head's attention probabilities
    probs_ref[0, 0] = p

    # context for this head, then accumulate its slice of the output projection
    ctx = jnp.dot(p.astype(jnp.bfloat16), v.astype(jnp.bfloat16),
                  preferred_element_type=jnp.float32)        # (Sp, dh)
    acc_ref[...] += jnp.dot(ctx.astype(jnp.bfloat16), wo_ref[0],
                            preferred_element_type=jnp.float32)

    @pl.when(h == pl.num_programs(1) - 1)
    def _():
        out_ref[0] = (acc_ref[...] + bo_ref[...]).astype(out_ref.dtype)


# ----------------------------------------------------------------------------
# Wrapper
# ----------------------------------------------------------------------------
def random_attention(hidden_states, params, mask, *, num_heads):
    """hidden_states: (B, S, H) float32; mask: (S, S) float32 0/1 keep-mask."""
    B, S, H = hidden_states.shape
    dh = H // num_heads
    Sp = _round_up(S, 128)                   # lane-dense scores / probs
    scale = 1.0 / math.sqrt(dh)

    wq, bq, wk, bk, wv, bv, wo, bo = params

    # Per-head weight layouts (bf16 for the MXU), biases stay f32.
    def to_head_w(w):                        # (H, H) -> (NH, H, dh)
        return w.reshape(H, num_heads, dh).transpose(1, 0, 2).astype(jnp.bfloat16)

    def to_head_b(b):                        # (H,) -> (NH, 1, dh)
        return b.reshape(1, num_heads, dh).transpose(1, 0, 2).astype(jnp.float32)

    wq_h, wk_h, wv_h = to_head_w(wq), to_head_w(wk), to_head_w(wv)
    bq_h, bk_h, bv_h = to_head_b(bq), to_head_b(bk), to_head_b(bv)
    wo_h = wo.reshape(num_heads, dh, H).astype(jnp.bfloat16)   # (NH, dh, H)
    bo_2d = bo.reshape(1, H).astype(jnp.float32)

    # Padded bf16 activations (padded rows are zeros, sliced off afterwards).
    x = jnp.zeros((B, Sp, H), jnp.bfloat16).at[:, :S, :].set(
        hidden_states.astype(jnp.bfloat16))

    # Additive mask bias: keep -> 0, dropped / padded key columns -> -1e9.
    bias = jnp.full((Sp, Sp), NEG_INF, dtype=jnp.float32)
    bias = bias.at[:S, :S].set(
        jnp.where(mask > 0.0, jnp.float32(0.0), jnp.float32(NEG_INF)))

    kernel = functools.partial(_random_attention_kernel, scale=scale)

    head_w_spec = pl.BlockSpec((1, H, dh), lambda b, h: (h, 0, 0))
    head_b_spec = pl.BlockSpec((1, 1, dh), lambda b, h: (h, 0, 0))

    out_p, probs_p = pl.pallas_call(
        kernel,
        out_shape=(
            jax.ShapeDtypeStruct((B, Sp, H), hidden_states.dtype),
            jax.ShapeDtypeStruct((B, num_heads, Sp, Sp), jnp.float32),
        ),
        grid_spec=pltpu.PrefetchScalarGridSpec(
            num_scalar_prefetch=0,
            grid=(B, num_heads),
            in_specs=[
                pl.BlockSpec((1, Sp, H), lambda b, h: (b, 0, 0)),        # x (reused across heads)
                head_w_spec,                                             # Wq[h]
                head_b_spec,                                             # bq[h]
                head_w_spec,                                             # Wk[h]
                head_b_spec,                                             # bk[h]
                head_w_spec,                                             # Wv[h]
                head_b_spec,                                             # bv[h]
                pl.BlockSpec((1, dh, H), lambda b, h: (h, 0, 0)),        # Wo[h]
                pl.BlockSpec((1, H), lambda b, h: (0, 0)),               # bo
                pl.BlockSpec((Sp, Sp), lambda b, h: (0, 0)),             # mask bias
            ],
            out_specs=[
                pl.BlockSpec((1, Sp, H), lambda b, h: (b, 0, 0)),        # out (accumulated over h)
                pl.BlockSpec((1, 1, Sp, Sp), lambda b, h: (b, h, 0, 0)), # probs (per head)
            ],
            scratch_shapes=[pltpu.VMEM((Sp, H), jnp.float32)],           # output-proj accumulator
        ),
        compiler_params=pltpu.CompilerParams(
            # head axis is a reduction (accumulated output projection) -> arbitrary
            dimension_semantics=("parallel", "arbitrary")),
    )(x, wq_h, bq_h, wk_h, bk_h, wv_h, bv_h, wo_h, bo_2d, bias)

    # TODO(synk): for very long sequences, add a query-tile grid axis so scores
    # are (TQ, Sp) per step instead of (Sp, Sp) (keeps v7x VMEM budget in check).
    return out_p[:, :S, :], probs_p[:, :, :S, :S]


# ----------------------------------------------------------------------------
# Glue: deterministic parameter init + random-mask construction (plain JAX)
# ----------------------------------------------------------------------------
def make_params(key, hidden_size):
    keys = jax.random.split(key, 8)
    scale = 1.0 / math.sqrt(hidden_size)

    def lin(kw, kb):
        w = jax.random.uniform(kw, (hidden_size, hidden_size),
                               minval=-scale, maxval=scale, dtype=jnp.float32)
        b = jax.random.uniform(kb, (hidden_size,),
                               minval=-scale, maxval=scale, dtype=jnp.float32)
        return w, b

    wq, bq = lin(keys[0], keys[1])
    wk, bk = lin(keys[2], keys[3])
    wv, bv = lin(keys[4], keys[5])
    wo, bo = lin(keys[6], keys[7])
    return (wq, bq, wk, bk, wv, bv, wo, bo)


def create_random_mask(key, seq_length, sparsity=0.5):
    """Mirrors Random_Attention.create_random_mask: per-row topk keep-mask,
    diagonal forced on. Returns float32 0/1 matrix (S, S)."""
    rand = jax.random.uniform(key, (seq_length, seq_length), dtype=jnp.float32)
    eye = jnp.eye(seq_length, dtype=jnp.float32)
    rand = rand * (1.0 - eye) + eye                       # fill_diagonal_(1)
    k = int(seq_length * (1.0 - sparsity))
    _, idx = jax.lax.top_k(rand, k)                       # (S, k)
    mask = jnp.zeros((seq_length, seq_length), dtype=jnp.float32)
    rows = jnp.arange(seq_length)[:, None]
    mask = mask.at[rows, idx].set(1.0)                    # scatter_(1, topk, 1)
    mask = jnp.maximum(mask, eye)                         # fill_diagonal_(1)
    return mask


def _reference(x, params, mask, num_heads):
    """Pure-JAX f32 reference of the PyTorch forward (eval mode, vis=True)."""
    wq, bq, wk, bk, wv, bv, wo, bo = params
    B, S, H = x.shape
    dh = H // num_heads

    def split(t):
        return t.reshape(B, S, num_heads, dh).transpose(0, 2, 1, 3)

    q = split(x @ wq + bq)
    k = split(x @ wk + bk)
    v = split(x @ wv + bv)
    scores = jnp.einsum('bhqd,bhkd->bhqk', q, k) / math.sqrt(dh)
    scores = jnp.where(mask[None, None] > 0.0, scores, NEG_INF)
    p = jax.nn.softmax(scores, axis=-1)
    ctx = jnp.einsum('bhqk,bhkd->bhqd', p, v)
    ctx = ctx.transpose(0, 2, 1, 3).reshape(B, S, H)
    out = ctx @ wo + bo
    return out, p


if __name__ == "__main__":
    # small config: hidden=32, heads=4 (head_dim=8), seq=8, batch=2
    B, S, H, NH = 2, 8, 32, 4

    root = jax.random.PRNGKey(0)
    k_x, k_p, k_m = jax.random.split(root, 3)

    x = jax.random.normal(k_x, (B, S, H), dtype=jnp.float32)
    params = make_params(k_p, H)
    mask = create_random_mask(k_m, S, sparsity=0.5)

    attn_out, attn_weights = random_attention(x, params, mask, num_heads=NH)
    jax.block_until_ready((attn_out, attn_weights))

    assert attn_out.shape == (B, S, H)
    assert attn_weights.shape == (B, NH, S, S)

    # attention probabilities sum to ~1 (approx reciprocal => loose tolerance)
    row_sums = jnp.sum(attn_weights, axis=-1)
    assert jnp.allclose(row_sums, 1.0, atol=5e-3), float(
        jnp.max(jnp.abs(row_sums - 1.0)))

    # parity vs pure-JAX f32 reference (bf16 MXU operands => loose tolerance)
    ref_out, ref_probs = _reference(x, params, mask, NH)
    assert jnp.allclose(attn_out, ref_out, atol=0.15, rtol=0.15), float(
        jnp.max(jnp.abs(attn_out - ref_out)))
    assert jnp.allclose(attn_weights, ref_probs, atol=0.08), float(
        jnp.max(jnp.abs(attn_weights - ref_probs)))

    print("KERNEL_OK")
</pallas_src>

<mosaic_0001>
module attributes {stable_mosaic.version = 11 : i64} {
  func.func @_random_attention_kernel(%arg0: i32, %arg1: i32, %arg2: memref<1x128x32xbf16, #tpu.memory_space<vmem>>, %arg3: memref<1x32x8xbf16, #tpu.memory_space<vmem>>, %arg4: memref<1x1x8xf32, #tpu.memory_space<vmem>>, %arg5: memref<1x32x8xbf16, #tpu.memory_space<vmem>>, %arg6: memref<1x1x8xf32, #tpu.memory_space<vmem>>, %arg7: memref<1x32x8xbf16, #tpu.memory_space<vmem>>, %arg8: memref<1x1x8xf32, #tpu.memory_space<vmem>>, %arg9: memref<1x8x32xbf16, #tpu.memory_space<vmem>>, %arg10: memref<1x32xf32, #tpu.memory_space<vmem>>, %arg11: memref<128x128xf32, #tpu.memory_space<vmem>>, %arg12: memref<1x128x32xf32, #tpu.memory_space<vmem>>, %arg13: memref<1x1x128x128xf32, #tpu.memory_space<vmem>>, %arg14: memref<128x32xf32, #tpu.memory_space<vmem>>) attributes {dimension_semantics = [#tpu.dimension_semantics<parallel>, #tpu.dimension_semantics<arbitrary>], iteration_bounds = array<i64: 2, 4>, scalar_prefetch = 0 : i64, scratch_operands = 1 : i64, tpu.core_type = #tpu.core_type<tc>, window_params = [{transform_indices = @transform_0, window_bounds = array<i64: 1, 128, 32>}, {transform_indices = @transform_1, window_bounds = array<i64: 1, 32, 8>}, {transform_indices = @transform_2, window_bounds = array<i64: 1, 1, 8>}, {transform_indices = @transform_3, window_bounds = array<i64: 1, 32, 8>}, {transform_indices = @transform_4, window_bounds = array<i64: 1, 1, 8>}, {transform_indices = @transform_5, window_bounds = array<i64: 1, 32, 8>}, {transform_indices = @transform_6, window_bounds = array<i64: 1, 1, 8>}, {transform_indices = @transform_7, window_bounds = array<i64: 1, 8, 32>}, {pipeline_mode = #tpu.pipeline_mode<synchronous>, transform_indices = @transform_8, window_bounds = array<i64: 1, 32>}, {pipeline_mode = #tpu.pipeline_mode<synchronous>, transform_indices = @transform_9, window_bounds = array<i64: 128, 128>}, {transform_indices = @transform_10, window_bounds = array<i64: 1, 128, 32>}, {transform_indices = @transform_11, window_bounds = array<i64: 1, 1, 128, 128>}]} {
    %c0_i32 = arith.constant 0 : i32
    %0 = arith.cmpi eq, %arg1, %c0_i32 : i32
    %1 = arith.extui %0 : i1 to i32
    %c0_i32_0 = arith.constant 0 : i32
    %2 = arith.cmpi ne, %1, %c0_i32_0 : i32
    scf.if %2 {
      %cst_43 = arith.constant 0.000000e+00 : f32
      %59 = vector.broadcast %cst_43 : f32 to vector<128x32xf32>
      %c0_44 = arith.constant 0 : index
      %c0_45 = arith.constant 0 : index
      %60 = vector.load %arg14[%c0_44, %c0_45] : memref<128x32xf32, #tpu.memory_space<vmem>>, vector<128x32xf32>
      tpu.vector_store %arg14[%c0_44, %c0_45], %59 {strides = array<i32>} : memref<128x32xf32, #tpu.memory_space<vmem>>, vector<128x32xf32>,
    } else {
    }
    %c0 = arith.constant 0 : index
    %c0_1 = arith.constant 0 : index
    %c0_2 = arith.constant 0 : index
    %3 = vector.load %arg2[%c0, %c0_1, %c0_2] : memref<1x128x32xbf16, #tpu.memory_space<vmem>>, vector<1x128x32xbf16>
    %4 = vector.shape_cast %3 : vector<1x128x32xbf16> to vector<128x32xbf16>
    %c0_3 = arith.constant 0 : index
    %c0_4 = arith.constant 0 : index
    %c0_5 = arith.constant 0 : index
    %5 = vector.load %arg3[%c0_3, %c0_4, %c0_5] : memref<1x32x8xbf16, #tpu.memory_space<vmem>>, vector<1x32x8xbf16>
    %6 = vector.shape_cast %5 : vector<1x32x8xbf16> to vector<32x8xbf16>
    %cst = arith.constant dense<0.000000e+00> : vector<128x8xf32>
    %7 = tpu.matmul %4, %6, %cst {dimension_numbers = #tpu.dot_dimension_numbers<[1], [0], [0], [1], [0, 0, 1, 1], [], []>} : vector<128x32xbf16>, vector<32x8xbf16>, vector<128x8xf32> -> vector<128x8xf32>
    %c0_6 = arith.constant 0 : index
    %c0_7 = arith.constant 0 : index
    %c0_8 = arith.constant 0 : index
    %8 = vector.load %arg4[%c0_6, %c0_7, %c0_8] : memref<1x1x8xf32, #tpu.memory_space<vmem>>, vector<1x1x8xf32>
    %9 = vector.shape_cast %8 : vector<1x1x8xf32> to vector<1x8xf32>
    %10 = vector.broadcast %9 : vector<1x8xf32> to vector<128x8xf32>
    %11 = arith.addf %7, %10 : vector<128x8xf32>
    %c0_9 = arith.constant 0 : index
    %c0_10 = arith.constant 0 : index
    %c0_11 = arith.constant 0 : index
    %12 = vector.load %arg5[%c0_9, %c0_10, %c0_11] : memref<1x32x8xbf16, #tpu.memory_space<vmem>>, vector<1x32x8xbf16>
    %13 = vector.shape_cast %12 : vector<1x32x8xbf16> to vector<32x8xbf16>
    %cst_12 = arith.constant dense<0.000000e+00> : vector<128x8xf32>
    %14 = tpu.matmul %4, %13, %cst_12 {dimension_numbers = #tpu.dot_dimension_numbers<[1], [0], [0], [1], [0, 0, 1, 1], [], []>} : vector<128x32xbf16>, vector<32x8xbf16>, vector<128x8xf32> -> vector<128x8xf32>
    %c0_13 = arith.constant 0 : index
    %c0_14 = arith.constant 0 : index
    %c0_15 = arith.constant 0 : index
    %15 = vector.load %arg6[%c0_13, %c0_14, %c0_15] : memref<1x1x8xf32, #tpu.memory_space<vmem>>, vector<1x1x8xf32>
    %16 = vector.shape_cast %15 : vector<1x1x8xf32> to vector<1x8xf32>
    %17 = vector.broadcast %16 : vector<1x8xf32> to vector<128x8xf32>
    %18 = arith.addf %14, %17 : vector<128x8xf32>
    %c0_16 = arith.constant 0 : index
    %c0_17 = arith.constant 0 : index
    %c0_18 = arith.constant 0 : index
    %19 = vector.load %arg7[%c0_16, %c0_17, %c0_18] : memref<1x32x8xbf16, #tpu.memory_space<vmem>>, vector<1x32x8xbf16>
    %20 = vector.shape_cast %19 : vector<1x32x8xbf16> to vector<32x8xbf16>
    %cst_19 = arith.constant dense<0.000000e+00> : vector<128x8xf32>
    %21 = tpu.matmul %4, %20, %cst_19 {dimension_numbers = #tpu.dot_dimension_numbers<[1], [0], [0], [1], [0, 0, 1, 1], [], []>} : vector<128x32xbf16>, vector<32x8xbf16>, vector<128x8xf32> -> vector<128x8xf32>
    %c0_20 = arith.constant 0 : index
    %c0_21 = arith.constant 0 : index
    %c0_22 = arith.constant 0 : index
    %22 = vector.load %arg8[%c0_20, %c0_21, %c0_22] : memref<1x1x8xf32, #tpu.memory_space<vmem>>, vector<1x1x8xf32>
    %23 = vector.shape_cast %22 : vector<1x1x8xf32> to vector<1x8xf32>
    %24 = vector.broadcast %23 : vector<1x8xf32> to vector<128x8xf32>
    %25 = arith.addf %21, %24 : vector<128x8xf32>
    %cst_23 = arith.constant 0.353553385 : f32
    %26 = vector.broadcast %cst_23 : f32 to vector<128x8xf32>
    %27 = arith.mulf %11, %26 : vector<128x8xf32>
    %28 = arith.truncf %27 : vector<128x8xf32> to vector<128x8xbf16>
    %29 = arith.truncf %18 : vector<128x8xf32> to vector<128x8xbf16>
    %cst_24 = arith.constant dense<0.000000e+00> : vector<128x128xf32>
    %30 = tpu.matmul %28, %29, %cst_24 {dimension_numbers = #tpu.dot_dimension_numbers<[1], [1], [0], [0], [0, 0, 1, 0], [], []>} : vector<128x8xbf16>, vector<128x8xbf16>, vector<128x128xf32> -> vector<128x128xf32>
    %c0_25 = arith.constant 0 : index
    %c0_26 = arith.constant 0 : index
    %31 = vector.load %arg11[%c0_25, %c0_26] : memref<128x128xf32, #tpu.memory_space<vmem>>, vector<128x128xf32>
    %32 = arith.addf %30, %31 : vector<128x128xf32>
    %cst_27 = arith.constant dense<0xFF800000> : vector<128xf32>
    %33 = vector.multi_reduction <maximumf>, %32, %cst_27 [1] : vector<128x128xf32> to vector<128xf32>
    %34 = vector.shape_cast %33 : vector<128xf32> to vector<128x1xf32>
    %35 = vector.broadcast %34 : vector<128x1xf32> to vector<128x128xf32>
    %36 = arith.subf %32, %35 : vector<128x128xf32>
    %37 = math.exp %36 : vector<128x128xf32>
    %cst_28 = arith.constant dense<0.000000e+00> : vector<128xf32>
    %38 = vector.multi_reduction <add>, %37, %cst_28 [1] : vector<128x128xf32> to vector<128xf32>
    %39 = vector.shape_cast %38 : vector<128xf32> to vector<128x1xf32>
    %40 = tpu.reciprocal %39 {approx = true} : vector<128x1xf32> -> vector<128x1xf32>
    %41 = vector.broadcast %40 : vector<128x1xf32> to vector<128x128xf32>
    %42 = arith.mulf %37, %41 : vector<128x128xf32>
    %c0_29 = arith.constant 0 : index
    %c0_30 = arith.constant 0 : index
    %c0_31 = arith.constant 0 : index
    %c0_32 = arith.constant 0 : index
    %43 = vector.load %arg13[%c0_29, %c0_30, %c0_31, %c0_32] : memref<1x1x128x128xf32, #tpu.memory_space<vmem>>, vector<1x1x128x128xf32>
    %44 = vector.shape_cast %43 : vector<1x1x128x128xf32> to vector<128x128xf32>
    %45 = vector.shape_cast %42 : vector<128x128xf32> to vector<1x1x128x128xf32>
    tpu.vector_store %arg13[%c0_29, %c0_30, %c0_31, %c0_32], %45 {strides = array<i32>} : memref<1x1x128x128xf32, #tpu.memory_space<vmem>>, vector<1x1x128x128xf32>,
    %46 = arith.truncf %42 : vector<128x128xf32> to vector<128x128xbf16>
    %47 = arith.truncf %25 : vector<128x8xf32> to vector<128x8xbf16>
    %cst_33 = arith.constant dense<0.000000e+00> : vector<128x8xf32>
    %48 = tpu.matmul %46, %47, %cst_33 {dimension_numbers = #tpu.dot_dimension_numbers<[1], [0], [0], [1], [0, 0, 1, 1], [], []>} : vector<128x128xbf16>, vector<128x8xbf16>, vector<128x8xf32> -> vector<128x8xf32>
    %c0_34 = arith.constant 0 : index
    %c0_35 = arith.constant 0 : index
    %49 = vector.load %arg14[%c0_34, %c0_35] : memref<128x32xf32, #tpu.memory_space<vmem>>, vector<128x32xf32>
    %50 = arith.truncf %48 : vector<128x8xf32> to vector<128x8xbf16>
    %c0_36 = arith.constant 0 : index
    %c0_37 = arith.constant 0 : index
    %c0_38 = arith.constant 0 : index
    %51 = vector.load %arg9[%c0_36, %c0_37, %c0_38] : memref<1x8x32xbf16, #tpu.memory_space<vmem>>, vector<1x8x32xbf16>
    %52 = vector.shape_cast %51 : vector<1x8x32xbf16> to vector<8x32xbf16>
    %cst_39 = arith.constant dense<0.000000e+00> : vector<128x32xf32>
    %53 = tpu.matmul %50, %52, %cst_39 {dimension_numbers = #tpu.dot_dimension_numbers<[1], [0], [0], [1], [0, 0, 1, 1], [], []>} : vector<128x8xbf16>, vector<8x32xbf16>, vector<128x32xf32> -> vector<128x32xf32>
    %54 = arith.addf %49, %53 : vector<128x32xf32>
    %c0_40 = arith.constant 0 : index
    %c0_41 = arith.constant 0 : index
    %55 = vector.load %arg14[%c0_40, %c0_41] : memref<128x32xf32, #tpu.memory_space<vmem>>, vector<128x32xf32>
    tpu.vector_store %arg14[%c0_40, %c0_41], %54 {strides = array<i32>} : memref<128x32xf32, #tpu.memory_space<vmem>>, vector<128x32xf32>,
    %c3_i32 = arith.constant 3 : i32
    %56 = arith.cmpi eq, %arg1, %c3_i32 : i32
    %57 = arith.extui %56 : i1 to i32
    %c0_i32_42 = arith.constant 0 : i32
    %58 = arith.cmpi ne, %57, %c0_i32_42 : i32
    scf.if %58 {
      %c0_43 = arith.constant 0 : index
      %c0_44 = arith.constant 0 : index
      %59 = vector.load %arg14[%c0_43, %c0_44] : memref<128x32xf32, #tpu.memory_space<vmem>>, vector<128x32xf32>
      %c0_45 = arith.constant 0 : index
      %c0_46 = arith.constant 0 : index
      %60 = vector.load %arg10[%c0_45, %c0_46] : memref<1x32xf32, #tpu.memory_space<vmem>>, vector<1x32xf32>
      %61 = vector.broadcast %60 : vector<1x32xf32> to vector<128x32xf32>
      %62 = arith.addf %59, %61 : vector<128x32xf32>
      %c0_47 = arith.constant 0 : index
      %c0_48 = arith.constant 0 : index
      %c0_49 = arith.constant 0 : index
      %63 = vector.load %arg12[%c0_47, %c0_48, %c0_49] : memref<1x128x32xf32, #tpu.memory_space<vmem>>, vector<1x128x32xf32>
      %64 = vector.shape_cast %63 : vector<1x128x32xf32> to vector<128x32xf32>
      %65 = vector.shape_cast %62 : vector<128x32xf32> to vector<1x128x32xf32>
      tpu.vector_store %arg12[%c0_47, %c0_48, %c0_49], %65 {strides = array<i32>} : memref<1x128x32xf32, #tpu.memory_space<vmem>>, vector<1x128x32xf32>,
    } else {
    }
    return
  }
  func.func @transform_0(%arg0: i32, %arg1: i32) -> (i32, i32, i32) {
    %c0_i32 = arith.constant 0 : i32
    %c0_i32_0 = arith.constant 0 : i32
    %c0_i32_1 = arith.constant 0 : i32
    return %arg0, %c0_i32, %c0_i32_0 : i32, i32, i32
  }
  func.func @transform_1(%arg0: i32, %arg1: i32) -> (i32, i32, i32) {
    %c0_i32 = arith.constant 0 : i32
    %c0_i32_0 = arith.constant 0 : i32
    %c0_i32_1 = arith.constant 0 : i32
    return %arg1, %c0_i32, %c0_i32_0 : i32, i32, i32
  }
  func.func @transform_2(%arg0: i32, %arg1: i32) -> (i32, i32, i32) {
    %c0_i32 = arith.constant 0 : i32
    %c0_i32_0 = arith.constant 0 : i32
    %c0_i32_1 = arith.constant 0 : i32
    return %arg1, %c0_i32, %c0_i32_0 : i32, i32, i32
  }
  func.func @transform_3(%arg0: i32, %arg1: i32) -> (i32, i32, i32) {
    %c0_i32 = arith.constant 0 : i32
    %c0_i32_0 = arith.constant 0 : i32
    %c0_i32_1 = arith.constant 0 : i32
    return %arg1, %c0_i32, %c0_i32_0 : i32, i32, i32
  }
  func.func @transform_4(%arg0: i32, %arg1: i32) -> (i32, i32, i32) {
    %c0_i32 = arith.constant 0 : i32
    %c0_i32_0 = arith.constant 0 : i32
    %c0_i32_1 = arith.constant 0 : i32
    return %arg1, %c0_i32, %c0_i32_0 : i32, i32, i32
  }
  func.func @transform_5(%arg0: i32, %arg1: i32) -> (i32, i32, i32) {
    %c0_i32 = arith.constant 0 : i32
    %c0_i32_0 = arith.constant 0 : i32
    %c0_i32_1 = arith.constant 0 : i32
    return %arg1, %c0_i32, %c0_i32_0 : i32, i32, i32
  }
  func.func @transform_6(%arg0: i32, %arg1: i32) -> (i32, i32, i32) {
    %c0_i32 = arith.constant 0 : i32
    %c0_i32_0 = arith.constant 0 : i32
    %c0_i32_1 = arith.constant 0 : i32
    return %arg1, %c0_i32, %c0_i32_0 : i32, i32, i32
  }
  func.func @transform_7(%arg0: i32, %arg1: i32) -> (i32, i32, i32) {
    %c0_i32 = arith.constant 0 : i32
    %c0_i32_0 = arith.constant 0 : i32
    %c0_i32_1 = arith.constant 0 : i32
    return %arg1, %c0_i32, %c0_i32_0 : i32, i32, i32
  }
  func.func @transform_8(%arg0: i32, %arg1: i32) -> (i32, i32) {
    %c0_i32 = arith.constant 0 : i32
    %c0_i32_0 = arith.constant 0 : i32
    %c0_i32_1 = arith.constant 0 : i32
    return %c0_i32, %c0_i32_0 : i32, i32
  }
  func.func @transform_9(%arg0: i32, %arg1: i32) -> (i32, i32) {
    %c0_i32 = arith.constant 0 : i32
    %c0_i32_0 = arith.constant 0 : i32
    %c0_i32_1 = arith.constant 0 : i32
    return %c0_i32, %c0_i32_0 : i32, i32
  }
  func.func @transform_10(%arg0: i32, %arg1: i32) -> (i32, i32, i32) {
    %c0_i32 = arith.constant 0 : i32
    %c0_i32_0 = arith.constant 0 : i32
    %c0_i32_1 = arith.constant 0 : i32
    return %arg0, %c0_i32, %c0_i32_0 : i32, i32, i32
  }
  func.func @transform_11(%arg0: i32, %arg1: i32) -> (i32, i32, i32, i32) {
    %c0_i32 = arith.constant 0 : i32
    %c0_i32_0 = arith.constant 0 : i32
    %c0_i32_1 = arith.constant 0 : i32
    return %arg0, %arg1, %c0_i32, %c0_i32_0 : i32, i32, i32, i32
  }
}

</mosaic_0001>

<bundles_post_ra>
// kernel: tpu_custom_call.1
= control target key start
LH: loop header
LB: loop body
LE: loop exit
PB: predicated region body
PF: predicated region fallthrough
CT: control target
= control target key end

     0   :  { %s3184_s0 = inlined_call_operand.vmem [shape: bf16[2,128,32], index: 0, kind: input, shape index: {}]   ;;  %s3185_s1 = inlined_call_operand.vmem [shape: bf16[4,32,8], index: 1, kind: input, shape index: {}]   ;;  %s3186_s2 = inlined_call_operand.vmem [shape: f32[4,1,8], index: 2, kind: input, shape index: {}]   ;;  %s3187_s3 = inlined_call_operand.vmem [shape: bf16[4,32,8], index: 3, kind: input, shape index: {}]   ;;  %s3188_s4 = inlined_call_operand.vmem [shape: f32[4,1,8], index: 4, kind: input, shape index: {}]   ;;  %s3189_s5 = inlined_call_operand.vmem [shape: bf16[4,32,8], index: 5, kind: input, shape index: {}]   ;;  %s3190_s6 = inlined_call_operand.vmem [shape: f32[4,1,8], index: 6, kind: input, shape index: {}]   ;;  %s3191_s7 = inlined_call_operand.vmem [shape: bf16[4,8,32], index: 7, kind: input, shape index: {}]   ;;  %s3192_s8 = inlined_call_operand.vmem [shape: f32[1,32], index: 8, kind: input, shape index: {}]   ;;  %s3193_s9 = inlined_call_operand.vmem [shape: f32[128,128], index: 9, kind: input, shape index: {}]   ;;  %s3194_s10 = inlined_call_operand.vmem [shape: f32[2,128,32], index: 10, kind: output, shape index: {0}]   ;;  %s3195_s11 = inlined_call_operand.hbm [shape: f32[2,4,128,128], index: 11, kind: output, shape index: {1}]  }
   0x1   :  { %3211 = sst [smem:[#allocation18_spill]] %s3184_s0 }
   0x2   :  { %3212 = sst [smem:[#allocation19_spill]] %s3185_s1 }
   0x3   :  { %3213 = sst [smem:[#allocation20_spill]] %s3187_s3 }
   0x4   :  { %3214 = sst [smem:[#allocation21_spill]] %s3195_s11 }
   0x5   :  { %17 = vsyncpa [#allocation4], 0 }
   0x6   :  { %19 = vsyncpa [#allocation4 + $0x1], 0  ;;  %s2528_s17 = smov 0   ;;  %s2530_s18 = smov 0  }
   0x7   :  { %s2532_s19 = smov 0   ;;  %s2534_s20 = smov 0  }
   0x8   :  { %s2536_s21 = smov 0   ;;  %s2538_s22 = smov 0  }
   0x9   :  { %s2540_s23 = smov 0   ;;  %s2542_s24 = smov 0  }
   0xa LB: > { %3215 = sst [smem:[#allocation6_spill]] %s2434_s17  ;;  %s1902_s25 = sadd.s32 4294967295, %s2462_s24   ;;  %s2462_s24 = sphi %s2542_s24, %s25_s24   ;;  %s2458_s23 = sphi %s2540_s23, %s3248_s23   ;;  %s2454_s22 = sphi %s2538_s22, %s3247_s22   ;;  %s2450_s21 = sphi %s2536_s21, %s3246_s21   ;;  %s2446_s20 = sphi %s2534_s20, %s3245_s20   ;;  %s2442_s19 = sphi %s2532_s19, %s3244_s19   ;;  %s2438_s18 = sphi %s2530_s18, %s3243_s18   ;;  %s2434_s17 = sphi %s2528_s17, %s3242_s17  }
   0xb   : > { %3216 = sst [smem:[#allocation7_spill]] %s2438_s18  ;;  %s1903_s26 = sadd.s32 4294967294, %s2462_s24  }
   0xc   : > { %3217 = sst [smem:[#allocation8_spill]] %s2442_s19  ;;  %s34_s27 = sadd.s32 1, %s2454_s22 }
   0xd   : > { %3218 = sst [smem:[#allocation9_spill]] %s2450_s21  ;;  %p35_p0 = scmp.ge.s32.totalorder %s34_s27, 4 }
   0xe   : > { %3219 = sst [smem:[#allocation10_spill]] %s2454_s22  ;;  %s37_s28 = sadd.s32 1, %s2458_s23 }
   0xf   : > { %3220 = sst [smem:[#allocation11_spill]] %s2458_s23  ;;  %p332_p1 = scmp.ne.s32.totalorder %s2442_s19, %s2438_s18 }
  0x10   : > { %3221 = sst [smem:[#allocation12_spill]] %s2462_s24  ;;  %p333_p2 = scmp.eq.s32.totalorder %s1902_s25, 7 }
  0x11   : > { %s3250_s27 = smov (%p35_p0, %s34_s27), 0  ;;  %s3252_s28 = smov (!%p35_p0, %s37_s28), %s2458_s23 }
  0x12   : > { %3222 = sst [smem:[#allocation13_spill]] %s3250_s27  ;;  %s318_s29 = ssub.s32 %s2454_s22, %s3250_s27 }
  0x13   : > { %p2579_p3 = por %p333_p2, %p332_p1  ;;  %p39_p4 = scmp.ge.s32.totalorder %s3252_s28, 2 }
  0x14   : > { %p338_p5 = scmp.ne.s32.totalorder %s2438_s18, %s2434_s17  ;;  %p339_p6 = scmp.eq.s32.totalorder %s1903_s26, 7 }
  0x15   : > { %s3223_s30 = scalar_select %p2579_p3, 1, 0 }
  0x16   : > { %p1906_p7 = scmp.ge.s32.totalorder %s2462_s24, 1  ;;  %s3254_s28 = smov (%p39_p4, %s3252_s28), 0 }
  0x17   : > { %3224 = sst [smem:[#allocation14_spill]] %s3223_s30  ;;  %p2588_p8 = por %p339_p6, %p338_p5 }
  0x18   : > { %3225 = sst [smem:[#allocation15_spill]] %s3254_s28  ;;  %p420_p9 = scmp.lt.s32.totalorder %s2462_s24, 9 }
  0x19   : > { %s3226_s12 = scalar_select %p2588_p8, 1, 0 }
  0x1a   : > { %s317_s13 = ssub.s32 %s2458_s23, %s3254_s28  ;;  %s322_s14 = sadd.s32 1, %s2442_s19 }
  0x1b   : > { %3227 = sst [smem:[#allocation16_spill]] %s3226_s12  ;;  %s319_s15 = sor.u32 %s318_s29, %s317_s13 }
  0x1c   : > { %p421_p10 = pnand %p1906_p7, %p420_p9  ;;  %p320_p11 = scmp.eq.s32.totalorder %s319_s15, 0 }
  0x1d   : > { %s3201_s25 = sand.u32 (!%p421_p10), 1, %s2438_s18   ;;  %p493_p12 = scmp.lt.s32.totalorder (!%p421_p10), %s2450_s21, 1 }
  0x1e   : > { %s2597_s16 = scalar_select %p320_p11, %s2442_s19, %s322_s14  }
  0x1f   : > { %424 = sbr.rel (%p421_p10) target bundleno = 1398 (0x576), region = 60  ;;  %s1907_s26 = sshll.u32 (!%p421_p10), %s3201_s25, 7 }
  0x20   : > { %3228 = sst [smem:[#allocation17_spill]] %s2597_s16  ;;  %p498_p13 = scmp.lt.s32.totalorder (!%p421_p10), %s2446_s20, 3 }
  0x21   : > { %s3229_s0 = sld [smem:[#allocation18_spill]] (!%p421_p10)  ;;  %s3230_s1 = sld [smem:[#allocation19_spill]] (!%p421_p10) }
  0x22   : > { %s3231_s3 = sld [smem:[#allocation20_spill]] (!%p421_p10)  ;;  %p1919_p0 = scmp.ne.s32.totalorder (!%p421_p10), %s2446_s20, 0 }
  0x26   : > { %s494_s27 = scalar_select %p493_p12, %s2450_s21, 1 }
  0x27   : > { %s2606_s28 = scalar_select %p498_p13, %s2446_s20, 3 }
  0x28   : > { %s1985_s29 = sshll.u32 %s494_s27, 6  ;;  %s1989_s13 = sshll.u32 %s494_s27, 7  ;;  %vm536_vm0 = vcmask (!%p1919_p0), 261120   ;;  %v2464_v0 = vmov (!%p1919_p0), 0.0  }
  0x29   : > { %s2611_s23 = scalar_lea.vmem %s3229_s0, %s1985_s29  ;;  %s1986_s22 = sshll.u32 %s2606_s28, 4  ;;  %537 = vst.msk [vmem:[#allocation2] sm:$0xff] (!%p1919_p0), %vm536_vm0, %v2464_v0  ;;  %538 = vst.msk [vmem:[#allocation2 + $0x8] sm:$0xff] (!%p1919_p0), %vm536_vm0, %v2464_v0 }
  0x2a   : > { %s2617_s25 = scalar_lea.vmem %s3230_s1, %s1986_s22  ;;  %s2626_s18 = scalar_lea.vmem %s3231_s3, %s1986_s22  ;;  %539 = vst.msk [vmem:[#allocation2 + $0x10] sm:$0xff] (!%p1919_p0), %vm536_vm0, %v2464_v0  ;;  %540 = vst.msk [vmem:[#allocation2 + $0x18] sm:$0xff] (!%p1919_p0), %vm536_vm0, %v2464_v0 }
  0x2b   : > { %s513_s29 = scalar_lea.vmem %s3188_s4, %s2606_s28  ;;  %s2635_s0 = scalar_lea.vmem %s3189_s5, %s1986_s22  ;;  %541 = vst.msk [vmem:[#allocation2 + $0x20] sm:$0xff] (!%p1919_p0), %vm536_vm0, %v2464_v0  ;;  %542 = vst.msk [vmem:[#allocation2 + $0x28] sm:$0xff] (!%p1919_p0), %vm536_vm0, %v2464_v0 }
  0x2c   : > { %s521_s1 = scalar_lea.vmem %s3190_s6, %s2606_s28  ;;  %s1916_s17 = sshll.u32 %s2606_s28, 2  ;;  %543 = vst.msk [vmem:[#allocation2 + $0x30] sm:$0xff] (!%p1919_p0), %vm536_vm0, %v2464_v0  ;;  %544 = vst.msk [vmem:[#allocation2 + $0x38] sm:$0xff] (!%p1919_p0), %vm536_vm0, %v2464_v0 }
  0x2d   : > { %s2645_s11 = scalar_lea.vmem %s3194_s10, %s1989_s13  ;;  %s2650_s21 = scalar_lea.vmem %s3191_s7, %s1916_s17  ;;  %545 = vst.msk [vmem:[#allocation2 + $0x40] sm:$0xff] (!%p1919_p0), %vm536_vm0, %v2464_v0  ;;  %546 = vst.msk [vmem:[#allocation2 + $0x48] sm:$0xff] (!%p1919_p0), %vm536_vm0, %v2464_v0 }
  0x2e   : > { %s2652_s27 = scalar_lea.vmem [#allocation3], %s1907_s26  ;;  %535 = sbr.rel (%p1919_p0) target bundleno = 53 (0x35), region = 64  ;;  %547 = vst.msk [vmem:[#allocation2 + $0x50] sm:$0xff] (!%p1919_p0), %vm536_vm0, %v2464_v0  ;;  %548 = vst.msk [vmem:[#allocation2 + $0x58] sm:$0xff] (!%p1919_p0), %vm536_vm0, %v2464_v0 }
  0x2f   : > { %549 = vst.msk [vmem:[#allocation2 + $0x60] sm:$0xff] (!%p1919_p0), %vm536_vm0, %v2464_v0  ;;  %550 = vst.msk [vmem:[#allocation2 + $0x68] sm:$0xff] (!%p1919_p0), %vm536_vm0, %v2464_v0 }
  0x30   : > { %551 = vst.msk [vmem:[#allocation2 + $0x70] sm:$0xff] (!%p1919_p0), %vm536_vm0, %v2464_v0  ;;  %552 = vst.msk [vmem:[#allocation2 + $0x78] sm:$0xff] (!%p1919_p0), %vm536_vm0, %v2464_v0 }
  0x35 PF: > { %v2290_v1 = vld [vmem:[%s2617_s25] sm:$0xff]   ;;  %v2291_v2 = vld [vmem:[%s2617_s25 + $0x8] sm:$0xff]   ;;  %vm632_vm1 = vcmask 261120   ;;  %v2683_v6 = vld [vmem:[%s2611_s23 + $0x30] sm:$0xff]   ;;  %s3232_s22 = scalar_lea.vmem %s3186_s2, %s2606_s28  ;;  %vm1042_vm2 = vcmask 64512   ;;  %vm1510_vm3 = vcmask 1043456  }
  0x36   : > { %2203 = vmatprep.subr.bf16.mxu1 %v2290_v1  ;;  %v2674_v3 = vld [vmem:[%s2611_s23 + $0x20] sm:$0xff]   ;;  %2061 = vmatprep.subr.bf16.mxu0 %v2290_v1  ;;  %v2680_v5 = vld [vmem:[%s2611_s23 + $0x28] sm:$0xff]   ;;  %v2696_v10 = vld [vmem:[%s2611_s23 + $0x10] sm:$0xff]   ;;  %p1977_p1 = scmp.ne.s32.totalorder %s2446_s20, 3 }
  0x37   : > { %2205 = vmatpush3.bf16.msra.mxu1 %v2290_v1  ;;  %2062 = vmatpush3.bf16.msra.mxu0 %v2290_v1  ;;  %v2294_v4 = vld [vmem:[%s2626_s18] sm:$0xff]   ;;  %v2297_v7 = vld [vmem:[%s2626_s18 + $0x8] sm:$0xff]   ;;  %v2703_v11 = vld [vmem:[%s2611_s23 + $0x38] sm:$0xff]  }
  0x38   : > { %2204 = vmatprep.subr.bf16.mxu1 %v2291_v2  ;;  %2073 = vmatprep.mubr.msk.bf16.mxu1 %vm632_vm1, %v2674_v3  ;;  %v2298_v8 = vld [vmem:[%s2611_s23] sm:$0xff]   ;;  %v2690_v9 = vld [vmem:[%s2611_s23 + $0x8] sm:$0xff]   ;;  %v2708_v12 = vld [vmem:[%s2611_s23 + $0x18] sm:$0xff]  }
  0x39   : > { %2063 = vmatprep.subr.bf16.mxu0 %v2291_v2  ;;  %2065 = vmatprep.mubr.msk.bf16.mxu0 %vm632_vm1, %v2298_v8  ;;  %v1920_v13 = vld [vmem:[%s3232_s22] ss:$0 sm:$0xff] }
  0x3b   : > { %2206 = vmatpush3.bf16.msra.mxu1 %v2291_v2  ;;  %2064 = vmatpush3.bf16.msra.mxu0 %v2291_v2 }
  0x3c   : > { %2081 = vmatprep.subr.bf16.mxu1 %v2294_v4 }
  0x3e   : > { %2074 = vmatmul.mubr.msk.bf16.vlgmr.msra.gmra.mrb[0].mxu1 %vm632_vm1, %v2680_v5  ;;  %2066 = vmatmul.mubr.msk.bf16.vlgmr.msra.gmra.mrb[0].mxu0 %vm632_vm1, %v2690_v9 }
  0x3f   : > { %2082 = vmatpush3.bf16.msra.mxu1 %v2294_v4  ;;  %2077 = vmatprep.mubr.msk.bf16.mxu1 %vm632_vm1, %v2683_v6 }
  0x40   : > { %2083 = vmatprep.subr.bf16.mxu1 %v2297_v7  ;;  %2069 = vmatprep.mubr.msk.bf16.mxu0 %vm632_vm1, %v2696_v10 }
  0x43   : > { %2084 = vmatpush3.bf16.msra.mxu1 %v2297_v7  ;;  %v1939_v7 = vld [vmem:[%s513_s29] ss:$0 sm:$0xff] }
  0x46   : > { %2078 = vmatmul.mubr.msk.bf16.gmra.mrb[4].mxu1 %vm632_vm1, %v2703_v11  ;;  %2070 = vmatmul.mubr.msk.bf16.gmra.mrb[4].mxu0 %vm632_vm1, %v2708_v12 }
  0x47   : > { %2085 = vmatprep.mubr.msk.bf16.mxu1 %vm632_vm1, %v2298_v8  ;;  %2105 = vmatprep.mubr.msk.bf16.mxu0 %vm632_vm1, %v2298_v8 }
  0x4e   : > { %2086 = vmatmul.mubr.msk.bf16.vlgmr.msra.gmra.mrb[8].mxu1 %vm632_vm1, %v2690_v9 }
  0x4f   : > { %2089 = vmatprep.mubr.msk.bf16.mxu1 %vm632_vm1, %v2696_v10 }
  0x56   : > { %2090 = vmatmul.mubr.msk.bf16.gmra.mrb[12].mxu1 %vm632_vm1, %v2708_v12 }
  0x57   : > { %2093 = vmatprep.mubr.msk.bf16.mxu1 %vm632_vm1, %v2674_v3 }
  0x5e   : > { %2094 = vmatmul.mubr.msk.bf16.gmra.mrb[16].mxu1 %vm632_vm1, %v2680_v5 }
  0x5f   : > { %2097 = vmatprep.mubr.msk.bf16.mxu1 %vm632_vm1, %v2683_v6 }
  0x66   : > { %2098 = vmatmul.mubr.msk.bf16.gmra.mrb[20].mxu1 %vm632_vm1, %v2703_v11 }
 0x111   : > { %v2075_v14 = vpop.f32.mrb[0].mxu1  ;;  %v2067_v19 = vpop.f32.mrb[0].mxu0 }
 0x112   : > { %v732_v15 = vadd.f32 %v2075_v14, %v1920_v13  ;;  %v723_v16 = vpop.f32.mrb[1].mxu1  ;;  %v700_v22 = vadd.f32 %v2067_v19, %v1920_v13  ;;  %v691_v23 = vpop.f32.mrb[1].mxu0 }
 0x113   : > { %v724_v17 = vadd.f32 %v1920_v13, %v723_v16  ;;  %v2076_v18 = vpop.f32.mrb[2].mxu1  ;;  %v692_v26 = vadd.f32 %v1920_v13, %v691_v23  ;;  %v2068_v27 = vpop.f32.mrb[2].mxu0 }
 0x114   : > { %v735_v20 = vadd.f32 %v2076_v18, %v1920_v13  ;;  %v726_v21 = vpop.f32.mrb[3].mxu1  ;;  %v2733_v24 = vmul.f32 0.35355338, %v732_v15  ;;  %v2737_v29 = vmul.f32 0.35355338, %v700_v22  ;;  %v703_v30 = vadd.f32 %v2068_v27, %v1920_v13  ;;  %v694_v31 = vpop.f32.mrb[3].mxu0 }
 0x115   : > { %v727_v25 = vadd.f32 %v1920_v13, %v726_v21  ;;  %v2739_v32 = vmul.f32 0.35355338, %v724_v17  ;;  %v994_v34 = vmul.f32 0.35355338, %v692_v26  ;;  %v695_v35 = vadd.f32 %v1920_v13, %v694_v31 }
 0x116   : > { %v2735_v28 = vmul.f32 0.35355338, %v735_v20  ;;  %v2745_v37 = vmul.f32 0.35355338, %v703_v30 }
 0x117   : > { %v2741_v33 = vmul.f32 0.35355338, %v727_v25  ;;  %v995_v40 = vmul.f32 0.35355338, %v695_v35 }
 0x118   : > { %v1015_v36 = vpack.c.bf16 %v2735_v28, %v2733_v24  ;;  %v1011_v43 = vpack.c.bf16 %v2745_v37, %v2737_v29  ;;  %v2302_v29 = vld [vmem:[%s2635_s0] sm:$0xff]   ;;  %v2303_v37 = vld [vmem:[%s2635_s0 + $0x8] sm:$0xff]  }
 0x119   : > { %v1014_v38 = vpack.c.bf16 %v2741_v33, %v2739_v32  ;;  %v2079_v39 = vpop.f32.mrb[4].mxu1  ;;  %v1010_v46 = vpack.c.bf16 %v995_v40, %v994_v34  ;;  %v2071_v47 = vpop.f32.mrb[4].mxu0  ;;  %2101 = vmatprep.subr.bf16.mxu0 %v2302_v29  ;;  %v1027_v32 = vld [vmem:[%s3193_s9 + $0x8] sm:$0xff] }
 0x11a   : > { %v748_v41 = vadd.f32 %v2079_v39, %v1920_v13  ;;  %v739_v42 = vpop.f32.mrb[5].mxu1  ;;  %v716_v50 = vadd.f32 %v2071_v47, %v1920_v13  ;;  %v707_v51 = vpop.f32.mrb[5].mxu0  ;;  %2102 = vmatpush3.bf16.msra.mxu0 %v2302_v29 }
 0x11b   : > { %v740_v44 = vadd.f32 %v1920_v13, %v739_v42  ;;  %v2080_v45 = vpop.f32.mrb[6].mxu1  ;;  %2137 = vmatprep.mubr.msk.bf16.mxu1 %vm1042_vm2, %v1010_v46  ;;  %v708_v54 = vadd.f32 %v1920_v13, %v707_v51  ;;  %v2072_v55 = vpop.f32.mrb[6].mxu0  ;;  %2103 = vmatprep.subr.bf16.mxu0 %v2303_v37 }
 0x11c   : > { %v751_v48 = vadd.f32 %v2080_v45, %v1920_v13  ;;  %v742_v49 = vpop.f32.mrb[7].mxu1  ;;  %v2751_v52 = vmul.f32 0.35355338, %v748_v41  ;;  %v2756_v57 = vmul.f32 0.35355338, %v716_v50  ;;  %v719_v58 = vadd.f32 %v2072_v55, %v1920_v13  ;;  %v710_v59 = vpop.f32.mrb[7].mxu0 }
 0x11d   : > { %v743_v53 = vadd.f32 %v1920_v13, %v742_v49  ;;  %v2758_v60 = vmul.f32 0.35355338, %v740_v44  ;;  %v2762_v62 = vmul.f32 0.35355338, %v708_v54  ;;  %v711_v63 = vadd.f32 %v1920_v13, %v710_v59 }
 0x11e   : > { %v2754_v56 = vmul.f32 0.35355338, %v751_v48  ;;  %v2766_v1 = vmul.f32 0.35355338, %v719_v58  ;;  %2104 = vmatpush3.bf16.msra.mxu0 %v2303_v37 }
 0x11f   : > { %v2760_v61 = vmul.f32 0.35355338, %v743_v53  ;;  %v2775_v8 = vmul.f32 0.35355338, %v711_v63 }
 0x120   : > { %v1017_v0 = vpack.c.bf16 %v2754_v56, %v2751_v52  ;;  %v1013_v13 = vpack.c.bf16 %v2766_v1, %v2756_v57  ;;  %v1031_v56 = vld [vmem:[%s3193_s9 + $0x28] sm:$0xff]  ;;  %v1033_v1 = vld [vmem:[%s3193_s9 + $0x38] sm:$0xff] }
 0x121   : > { %v1016_v2 = vpack.c.bf16 %v2760_v61, %v2758_v60  ;;  %v2087_v4 = vpop.f32.mrb[8].mxu1  ;;  %v1012_v16 = vpack.c.bf16 %v2775_v8, %v2762_v62  ;;  %2106 = vmatmul.mubr.msk.bf16.vlgmr.msra.gmra.mrb[8].mxu0 %vm632_vm1, %v2690_v9  ;;  %v1028_v9 = vld [vmem:[%s3193_s9 + $0x10] sm:$0xff]  ;;  %v1034_v8 = vld [vmem:[%s3193_s9 + $0x40] sm:$0xff] }
 0x122   : > { %v811_v14 = vpop.f32.mrb[9].mxu1  ;;  %v820_v17 = vadd.f32 %v2087_v4, %v1939_v7  ;;  %2109 = vmatprep.mubr.msk.bf16.mxu0 %vm632_vm1, %v2696_v10  ;;  %v1026_v10 = vld [vmem:[%s3193_s9] sm:$0xff]  ;;  %v1032_v61 = vld [vmem:[%s3193_s9 + $0x30] sm:$0xff] }
 0x123   : > { %v2088_v15 = vpop.f32.mrb[10].mxu1  ;;  %v812_v20 = vadd.f32 %v1939_v7, %v811_v14 }
 0x124   : > { %v823_v18 = vadd.f32 %v2088_v15, %v1939_v7  ;;  %v814_v19 = vpop.f32.mrb[11].mxu1 }
 0x125   : > { %v815_v21 = vadd.f32 %v1939_v7, %v814_v19 }
 0x126   : > { %v1019_v22 = vpack.c.bf16 %v823_v18, %v820_v17 }
 0x127   : > { %v1018_v23 = vpack.c.bf16 %v815_v21, %v812_v20 }
 0x128   : > { %v1071_v44 = vsel %vm1042_vm2, %v1019_v22, 0 }
 0x129   : > { %2207 = vmatprep.subr.msk.bf16.mxu1 %vm1042_vm2, %v1018_v23  ;;  %v1068_v25 = vsel %vm1042_vm2, %v1018_v23, 0  ;;  %v2091_v26 = vpop.f32.mrb[12].mxu1  ;;  %2110 = vmatmul.mubr.msk.bf16.gmra.mrb[12].mxu0 %vm632_vm1, %v2708_v12 }
 0x12a   : > { %2122 = vmatpush3.bf16.xpose.msra.mxu1 %v1068_v25  ;;  %v836_v27 = vadd.f32 %v2091_v26, %v1939_v7  ;;  %v827_v30 = vpop.f32.mrb[13].mxu1  ;;  %2113 = vmatprep.mubr.msk.bf16.mxu0 %vm632_vm1, %v2674_v3 }
 0x12b   : > { %2208 = vmatprep.subr.msk.bf16.mxu1 %vm1042_vm2, %v1019_v22  ;;  %v828_v31 = vadd.f32 %v1939_v7, %v827_v30  ;;  %v2092_v34 = vpop.f32.mrb[14].mxu1  ;;  %v1035_v30 = vld [vmem:[%s3193_s9 + $0x48] sm:$0xff] }
 0x12c   : > { %v839_v35 = vadd.f32 %v2092_v34, %v1939_v7  ;;  %v830_v39 = vpop.f32.mrb[15].mxu1 }
 0x12d   : > { %v831_v40 = vadd.f32 %v1939_v7, %v830_v39 }
 0x12e   : > { %v1021_v41 = vpack.c.bf16 %v839_v35, %v836_v27  ;;  %v1036_v35 = vld [vmem:[%s3193_s9 + $0x50] sm:$0xff] }
 0x12f   : > { %v1020_v42 = vpack.c.bf16 %v831_v40, %v828_v31 }
 0x130   : > { %v1077_v22 = vsel %vm1042_vm2, %v1021_v41, 0 }
 0x131   : > { %v2095_v45 = vpop.f32.mrb[16].mxu1  ;;  %v1074_v58 = vsel %vm1042_vm2, %v1020_v42, 0  ;;  %2114 = vmatmul.mubr.msk.bf16.gmra.mrb[16].mxu0 %vm632_vm1, %v2680_v5  ;;  %v1029_v5 = vld [vmem:[%s3193_s9 + $0x18] sm:$0xff] }
 0x132   : > { %2124 = vmatpush3.bf16.xpose.msra.mxu1 %v1071_v44  ;;  %v852_v46 = vadd.f32 %v2095_v45, %v1939_v7  ;;  %v843_v47 = vpop.f32.mrb[17].mxu1  ;;  %2117 = vmatprep.mubr.msk.bf16.mxu0 %vm632_vm1, %v2683_v6  ;;  %v1038_v44 = vld [vmem:[%s3193_s9 + $0x60] sm:$0xff] }
 0x133   : > { %2209 = vmatprep.subr.msk.bf16.mxu1 %vm1042_vm2, %v1020_v42  ;;  %v844_v48 = vadd.f32 %v1939_v7, %v843_v47  ;;  %v2096_v49 = vpop.f32.mrb[18].mxu1 }
 0x134   : > { %v855_v50 = vadd.f32 %v2096_v49, %v1939_v7  ;;  %v846_v51 = vpop.f32.mrb[19].mxu1 }
 0x135   : > { %v847_v53 = vadd.f32 %v1939_v7, %v846_v51  ;;  %v1040_v51 = vld [vmem:[%s3193_s9 + $0x70] sm:$0xff] }
 0x136   : > { %v1023_v54 = vpack.c.bf16 %v855_v50, %v852_v46 }
 0x137   : > { %v1022_v55 = vpack.c.bf16 %v847_v53, %v844_v48  ;;  %v1039_v48 = vld [vmem:[%s3193_s9 + $0x68] sm:$0xff] }
 0x138   : > { %v1083_v25 = vsel %vm1042_vm2, %v1023_v54, 0 }
 0x139   : > { %v2099_v59 = vpop.f32.mrb[20].mxu1  ;;  %v1080_v23 = vsel %vm1042_vm2, %v1022_v55, 0  ;;  %2118 = vmatmul.mubr.msk.bf16.gmra.mrb[20].mxu0 %vm632_vm1, %v2703_v11 }
 0x13a   : > { %2126 = vmatpush3.bf16.xpose.msra.mxu1 %v1074_v58  ;;  %v868_v63 = vadd.f32 %v2099_v59, %v1939_v7  ;;  %v859_v4 = vpop.f32.mrb[21].mxu1 }
 0x13b   : > { %2210 = vmatprep.subr.msk.bf16.mxu1 %vm1042_vm2, %v1021_v41  ;;  %v860_v14 = vadd.f32 %v1939_v7, %v859_v4  ;;  %v2100_v15 = vpop.f32.mrb[22].mxu1  ;;  %v1037_v41 = vld [vmem:[%s3193_s9 + $0x58] sm:$0xff] }
 0x13c   : > { %v871_v17 = vadd.f32 %v2100_v15, %v1939_v7  ;;  %v862_v18 = vpop.f32.mrb[23].mxu1 }
 0x13d   : > { %v863_v19 = vadd.f32 %v1939_v7, %v862_v18 }
 0x13e   : > { %v1025_v20 = vpack.c.bf16 %v871_v17, %v868_v63  ;;  %v2942_v63 = vld [vmem:[%s521_s1] ss:$0 sm:$0xff] }
 0x13f   : > { %v1024_v21 = vpack.c.bf16 %v863_v19, %v860_v14 }
 0x140   : > { %v1089_v26 = vsel %vm1042_vm2, %v1025_v20, 0 }
 0x141   : > { %v1086_v7 = vsel %vm1042_vm2, %v1024_v21, 0 }
 0x142   : > { %2128 = vmatpush3.bf16.xpose.msra.mxu1 %v1077_v22 }
 0x143   : > { %2211 = vmatprep.subr.msk.bf16.mxu1 %vm1042_vm2, %v1022_v55  ;;  %v1041_v55 = vld [vmem:[%s3193_s9 + $0x78] sm:$0xff] }
 0x14a   : > { %2130 = vmatpush3.bf16.xpose.msra.mxu1 %v1080_v23 }
 0x14b   : > { %2212 = vmatprep.subr.msk.bf16.mxu1 %vm1042_vm2, %v1023_v54 }
 0x152   : > { %2132 = vmatpush3.bf16.xpose.msra.mxu1 %v1083_v25 }
 0x153   : > { %2213 = vmatprep.subr.msk.bf16.mxu1 %vm1042_vm2, %v1024_v21 }
 0x15a   : > { %2134 = vmatpush3.bf16.xpose.msra.mxu1 %v1086_v7 }
 0x15b   : > { %2214 = vmatprep.subr.msk.bf16.mxu1 %vm1042_vm2, %v1025_v20 }
 0x162   : > { %2136 = vmatpush3.bf16.xpose.msra.mxu1 %v1089_v26 }
 0x169   : > { %2138 = vmatmul.mubr.msk.bf16.vlgmr.msra.gmra.mrb[24].mxu1 %vm1042_vm2, %v1011_v43 }
 0x16a   : > { %2141 = vmatprep.mubr.msk.bf16.mxu1 %vm1042_vm2, %v1012_v16 }
 0x171   : > { %2142 = vmatmul.mubr.msk.bf16.gmra.mrb[28].mxu1 %vm1042_vm2, %v1013_v13 }
 0x172   : > { %2145 = vmatprep.mubr.msk.bf16.mxu1 %vm1042_vm2, %v1014_v38  ;;  %v1030_v38 = vld [vmem:[%s3193_s9 + $0x20] sm:$0xff] }
 0x179   : > { %2146 = vmatmul.mubr.msk.bf16.gmra.mrb[32].mxu1 %vm1042_vm2, %v1015_v36 }
 0x17a   : > { %2149 = vmatprep.mubr.msk.bf16.mxu1 %vm1042_vm2, %v1016_v2 }
 0x181   : > { %2150 = vmatmul.mubr.msk.bf16.gmra.mrb[36].mxu1 %vm1042_vm2, %v1017_v0 }
 0x1f4   : > { %v2107_v4 = vpop.f32.mrb[8].mxu0 }
 0x1f5   : > { %v940_v14 = vadd.f32 %v2107_v4, %v2942_v63  ;;  %v931_v15 = vpop.f32.mrb[9].mxu0 }
 0x1f6   : > { %v932_v17 = vadd.f32 %v2942_v63, %v931_v15  ;;  %v2108_v18 = vpop.f32.mrb[10].mxu0 }
 0x1f7   : > { %v943_v19 = vadd.f32 %v2108_v18, %v2942_v63  ;;  %v934_v20 = vpop.f32.mrb[11].mxu0 }
 0x1f8   : > { %v935_v21 = vadd.f32 %v2942_v63, %v934_v20 }
 0x1f9   : > { %v1357_v22 = vpack.c.bf16 %v943_v19, %v940_v14 }
 0x1fa   : > { %v1356_v23 = vpack.c.bf16 %v935_v21, %v932_v17 }
 0x1fc   : > { %v2111_v25 = vpop.f32.mrb[12].mxu0  ;;  %2153 = vmatprep.subr.bf16.mxu0 %v1356_v23 }
 0x1fd   : > { %v956_v7 = vadd.f32 %v2111_v25, %v2942_v63  ;;  %v947_v26 = vpop.f32.mrb[13].mxu0  ;;  %2154 = vmatpush3.bf16.msra.mxu0 %v1356_v23 }
 0x1fe   : > { %v948_v29 = vadd.f32 %v2942_v63, %v947_v26  ;;  %v2112_v37 = vpop.f32.mrb[14].mxu0  ;;  %2155 = vmatprep.subr.bf16.mxu0 %v1357_v22 }
 0x201   : > { %2156 = vmatpush3.bf16.msra.mxu0 %v1357_v22 }
 0x23c   : > { %v2139_v12 = vpop.f32.mrb[24].mxu1 }
 0x23d   : > { %v2847_v24 = vadd.f32 %v2139_v12, %v1028_v9  ;;  %v1125_v3 = vpop.f32.mrb[25].mxu1  ;;  %v959_v9 = vadd.f32 %v2112_v37, %v2942_v63 }
 0x23e   : > { %v2849_v28 = vadd.f32 %v1125_v3, %v1026_v10  ;;  %v2140_v6 = vpop.f32.mrb[26].mxu1  ;;  %v950_v10 = vpop.f32.mrb[15].mxu0 }
 0x23f   : > { %1192 = vmax.xlane.f32.xlu1 %v2847_v24  ;;  %v1128_v11 = vpop.f32.mrb[27].mxu1  ;;  %v2859_v33 = vadd.f32 %v2140_v6, %v1029_v5  ;;  %v951_v12 = vadd.f32 %v2942_v63, %v950_v10  ;;  %v1359_v3 = vpack.c.bf16 %v959_v9, %v956_v7  ;;  %v2115_v6 = vpop.f32.mrb[16].mxu0 }
 0x240   : > { %1188 = vmax.xlane.f32.xlu0 %v2849_v28  ;;  %v2861_v36 = vadd.f32 %v1128_v11, %v1027_v32  ;;  %v972_v32 = vadd.f32 %v2115_v6, %v2942_v63 }
 0x241   : > { %v1358_v5 = vpack.c.bf16 %v951_v12, %v948_v29 }
 0x243   : > { %1194 = vmax.xlane.f32.xlu1 %v2859_v33  ;;  %2157 = vmatprep.subr.bf16.mxu0 %v1358_v5 }
 0x244   : > { %v2143_v43 = vpop.f32.mrb[28].mxu1  ;;  %1190 = vmax.xlane.f32.xlu0 %v2861_v36  ;;  %2158 = vmatpush3.bf16.msra.mxu0 %v1358_v5 }
 0x245   : > { %v1141_v52 = vpop.f32.mrb[29].mxu1  ;;  %v2882_v2 = vadd.f32 %v2143_v43, %v1032_v61  ;;  %2159 = vmatprep.subr.bf16.mxu0 %v1359_v3 }
 0x246   : > { %v2871_v57 = vadd.f32 %v1141_v52, %v1030_v38  ;;  %v2144_v60 = vpop.f32.mrb[30].mxu1  ;;  %v963_v38 = vpop.f32.mrb[17].mxu0 }
 0x247   : > { %v1144_v62 = vpop.f32.mrb[31].mxu1  ;;  %v2888_v13 = vadd.f32 %v2144_v60, %v1033_v1  ;;  %v2116_v60 = vpop.f32.mrb[18].mxu0 }
 0x248   : > { %v2876_v0 = vadd.f32 %v1144_v62, %v1031_v56  ;;  %1196 = vmax.xlane.f32.xlu0 %v2871_v57  ;;  %v964_v56 = vadd.f32 %v2942_v63, %v963_v38  ;;  %v975_v62 = vadd.f32 %v2116_v60, %v2942_v63  ;;  %v966_v1 = vpop.f32.mrb[19].mxu0  ;;  %2160 = vmatpush3.bf16.msra.mxu0 %v1359_v3 }
 0x24a   : > { %1198 = vmax.xlane.f32.xlu1 %v2876_v0 }
 0x24c   : > { %v2147_v16 = vpop.f32.mrb[32].mxu1  ;;  %1200 = vmax.xlane.f32.xlu0 %v2882_v2 }
 0x24d   : > { %v1157_v27 = vpop.f32.mrb[33].mxu1  ;;  %v2906_v42 = vadd.f32 %v2147_v16, %v1036_v35 }
 0x24e   : > { %v2894_v31 = vadd.f32 %v1157_v27, %v1034_v8  ;;  %v2148_v34 = vpop.f32.mrb[34].mxu1  ;;  %1202 = vmax.xlane.f32.xlu1 %v2888_v13  ;;  %v967_v8 = vadd.f32 %v2942_v63, %v966_v1 }
 0x24f   : > { %v1160_v39 = vpop.f32.mrb[35].mxu1  ;;  %v2912_v45 = vadd.f32 %v2148_v34, %v1037_v41 }
 0x250   : > { %v2900_v40 = vadd.f32 %v1160_v39, %v1035_v30  ;;  %1204 = vmax.xlane.f32.xlu0 %v2894_v31  ;;  %v1361_v30 = vpack.c.bf16 %v975_v62, %v972_v32  ;;  %v1360_v39 = vpack.c.bf16 %v967_v8, %v964_v56 }
 0x252   : > { %1206 = vmax.xlane.f32.xlu1 %v2900_v40  ;;  %2161 = vmatprep.subr.bf16.mxu0 %v1360_v39 }
 0x253   : > { %2162 = vmatpush3.bf16.msra.mxu0 %v1360_v39 }
 0x254   : > { %v2151_v46 = vpop.f32.mrb[36].mxu1  ;;  %1208 = vmax.xlane.f32.xlu0 %v2906_v42  ;;  %2163 = vmatprep.subr.bf16.mxu0 %v1361_v30 }
 0x255   : > { %v1173_v47 = vpop.f32.mrb[37].mxu1  ;;  %v2930_v58 = vadd.f32 %v2151_v46, %v1040_v51 }
 0x256   : > { %v2918_v49 = vadd.f32 %v1173_v47, %v1038_v44  ;;  %v2152_v50 = vpop.f32.mrb[38].mxu1  ;;  %1210 = vmax.xlane.f32.xlu1 %v2912_v45  ;;  %v2960_v44 = vpop.f32.mrb[20].mxu0 }
 0x257   : > { %v1176_v53 = vpop.f32.mrb[39].mxu1  ;;  %v2933_v59 = vadd.f32 %v2152_v50, %v1041_v55  ;;  %2164 = vmatpush3.bf16.msra.mxu0 %v1361_v30 }
 0x258   : > { %v2924_v54 = vadd.f32 %v1176_v53, %v1039_v48  ;;  %1212 = vmax.xlane.f32.xlu0 %v2918_v49 }
 0x25a   : > { %1214 = vmax.xlane.f32.xlu1 %v2924_v54 }
 0x25c   : > { %1216 = vmax.xlane.f32.xlu0 %v2930_v58 }
 0x25e   : > { %1218 = vmax.xlane.f32.xlu1 %v2933_v59 }
 0x2cc   : > { %v1193_v11 = vpop.xlane.xlu1 %1192 }
 0x2cd   : > { %v1222_v43 = vsub.f32 %v2847_v24, %v1193_v11  ;;  %v1189_v52 = vpop.xlane.xlu0 %1188 }
 0x2ce   : > { %v1220_v61 = vsub.f32 %v2849_v28, %v1189_v52  ;;  %v979_v52 = vpop.f32.mrb[21].mxu0 }
 0x2cf   : > { %v1240_v34 = vmul.f32 1.442695, %v1222_v43  ;;  %v988_v43 = vadd.f32 %v2960_v44, %v2942_v63  ;;  %v2120_v62 = vpop.f32.mrb[22].mxu0  ;;  %v1485_v44 = vld [vmem:[%s2650_s21] sm:$0xf] }
 0x2d0   : > { %v1236_v16 = vmul.f32 1.442695, %v1220_v61  ;;  %v1195_v27 = vpop.xlane.xlu1 %1194  ;;  %v980_v61 = vadd.f32 %v2942_v63, %v979_v52  ;;  %v982_v1 = vpop.f32.mrb[23].mxu0 }
 0x2d1   : > { %v1223_v35 = vsub.f32 %v2859_v33, %v1195_v27  ;;  %v1191_v24 = vpop.xlane.xlu0 %1190 }
 0x2d2   : > { %2304 = vpow2.f32 %v1236_v16  ;;  %v1221_v41 = vsub.f32 %v2861_v36, %v1191_v24  ;;  %v983_v16 = vadd.f32 %v2942_v63, %v982_v1 }
 0x2d3   : > { %2306 = vpow2.f32 %v1240_v34  ;;  %v1242_v46 = vmul.f32 1.442695, %v1223_v35 }
 0x2d4   : > { %v1238_v28 = vmul.f32 1.442695, %v1221_v41 }
 0x2d5   : > { %v1197_v47 = vpop.xlane.xlu0 %1196 }
 0x2d6   : > { %2308 = vpow2.f32 %v1238_v28  ;;  %v1224_v48 = vsub.f32 %v2871_v57, %v1197_v47  ;;  %v1512_v28 = vsel %vm1510_vm3, %v1485_v44, 0 }
 0x2d7   : > { %v1199_v50 = vpop.xlane.xlu1 %1198  ;;  %2310 = vpow2.f32 %v1242_v46 }
 0x2d8   : > { %v1244_v51 = vmul.f32 1.442695, %v1224_v48  ;;  %v1225_v33 = vsub.f32 %v2876_v0, %v1199_v50 }
 0x2d9   : > { %v1201_v53 = vpop.xlane.xlu0 %1200 }
 0x2da   : > { %2312 = vpow2.f32 %v1244_v51  ;;  %v1246_v36 = vmul.f32 1.442695, %v1225_v33  ;;  %v1226_v55 = vsub.f32 %v2882_v2, %v1201_v53 }
 0x2db   : > { %v1203_v4 = vpop.xlane.xlu1 %1202 }
 0x2dc   : > { %v2965_v14 = vpop.eup %2304  ;;  %v1248_v15 = vmul.f32 1.442695, %v1226_v55  ;;  %v1227_v17 = vsub.f32 %v2888_v13, %v1203_v4  ;;  %2314 = vpow2.f32 %v1246_v36 }
 0x2dd   : > { %1268 = vadd.xlane.f32.xlu0 %v2965_v14  ;;  %v1205_v57 = vpop.xlane.xlu0 %1204  ;;  %v2970_v19 = vpop.eup %2306 }
 0x2de   : > { %2316 = vpow2.f32 %v1248_v15  ;;  %v1250_v18 = vmul.f32 1.442695, %v1227_v17  ;;  %v1228_v0 = vsub.f32 %v2894_v31, %v1205_v57 }
 0x2df   : > { %v1207_v20 = vpop.xlane.xlu1 %1206 }
 0x2e0   : > { %v2972_v21 = vpop.eup %2308  ;;  %v1252_v2 = vmul.f32 1.442695, %v1228_v0  ;;  %v1229_v22 = vsub.f32 %v2900_v40, %v1207_v20  ;;  %2318 = vpow2.f32 %v1250_v18 }
 0x2e1   : > { %1272 = vadd.xlane.f32.xlu0 %v2970_v19  ;;  %1270 = vadd.xlane.f32.xlu1 %v2972_v21  ;;  %v1209_v13 = vpop.xlane.xlu0 %1208  ;;  %v2978_v7 = vpop.eup %2310 }
 0x2e2   : > { %2320 = vpow2.f32 %v1252_v2  ;;  %v1254_v23 = vmul.f32 1.442695, %v1229_v22  ;;  %v1230_v25 = vsub.f32 %v2906_v42, %v1209_v13 }
 0x2e3   : > { %v1211_v31 = vpop.xlane.xlu1 %1210 }
 0x2e4   : > { %v2980_v26 = vpop.eup %2312  ;;  %v1256_v29 = vmul.f32 1.442695, %v1230_v25  ;;  %v1231_v37 = vsub.f32 %v2912_v45, %v1211_v31  ;;  %2322 = vpow2.f32 %v1254_v23 }
 0x2e5   : > { %1274 = vadd.xlane.f32.xlu1 %v2978_v7  ;;  %1276 = vadd.xlane.f32.xlu0 %v2980_v26  ;;  %v1213_v40 = vpop.xlane.xlu0 %1212 }
 0x2e6   : > { %2324 = vpow2.f32 %v1256_v29  ;;  %v1258_v9 = vmul.f32 1.442695, %v1231_v37  ;;  %v1232_v10 = vsub.f32 %v2918_v49, %v1213_v40  ;;  %v2986_v12 = vpop.eup %2314 }
 0x2e7   : > { %v1215_v42 = vpop.xlane.xlu1 %1214 }
 0x2e8   : > { %v2988_v3 = vpop.eup %2316  ;;  %v1260_v5 = vmul.f32 1.442695, %v1232_v10  ;;  %v1233_v6 = vsub.f32 %v2924_v54, %v1215_v42  ;;  %2326 = vpow2.f32 %v1258_v9 }
 0x2e9   : > { %1278 = vadd.xlane.f32.xlu1 %v2986_v12  ;;  %1280 = vadd.xlane.f32.xlu0 %v2988_v3  ;;  %v1217_v45 = vpop.xlane.xlu0 %1216 }
 0x2ea   : > { %2328 = vpow2.f32 %v1260_v5  ;;  %v1262_v11 = vmul.f32 1.442695, %v1233_v6  ;;  %v1234_v32 = vsub.f32 %v2930_v58, %v1217_v45  ;;  %v2994_v38 = vpop.eup %2318  ;;  %v991_v58 = vadd.f32 %v2120_v62, %v2942_v63 }
 0x2eb   : > { %v1219_v49 = vpop.xlane.xlu1 %1218 }
 0x2ec   : > { %v2998_v56 = vpop.eup %2320  ;;  %v1264_v54 = vmul.f32 1.442695, %v1234_v32  ;;  %v1235_v60 = vsub.f32 %v2933_v59, %v1219_v49  ;;  %2330 = vpow2.f32 %v1262_v11  ;;  %v1363_v30 = vpack.c.bf16 %v991_v58, %v988_v43 }
 0x2ed   : > { %1282 = vadd.xlane.f32.xlu1 %v2994_v38  ;;  %1284 = vadd.xlane.f32.xlu0 %v2998_v56  ;;  %v1362_v59 = vpack.c.bf16 %v983_v16, %v980_v61 }
 0x2ee   : > { %2332 = vpow2.f32 %v1264_v54  ;;  %v1266_v8 = vmul.f32 1.442695, %v1235_v60  ;;  %v3006_v27 = vpop.eup %2322 }
 0x2ef   : > { %2165 = vmatprep.subr.bf16.mxu0 %v1362_v59 }
 0x2f0   : > { %v3008_v34 = vpop.eup %2324  ;;  %2334 = vpow2.f32 %v1266_v8  ;;  %2166 = vmatpush3.bf16.msra.mxu0 %v1362_v59 }
 0x2f1   : > { %1286 = vadd.xlane.f32.xlu1 %v3006_v27  ;;  %1288 = vadd.xlane.f32.xlu0 %v3008_v34 }
 0x2f2   : > { %v3012_v35 = vpop.eup %2326  ;;  %2167 = vmatprep.subr.bf16.mxu0 %v1363_v30 }
 0x2f4   : > { %v3014_v24 = vpop.eup %2328  ;;  %2168 = vmatpush3.bf16.msra.mxu0 %v1363_v30 }
 0x2f5   : > { %1290 = vadd.xlane.f32.xlu1 %v3012_v35  ;;  %1292 = vadd.xlane.f32.xlu0 %v3014_v24 }
 0x2f6   : > { %v3018_v63 = vpop.eup %2330  ;;  %2215 = vmatprep.subr.msk.bf16.mxu0 %vm1510_vm3, %v1485_v44 }
 0x2f8   : > { %v3020_v39 = vpop.eup %2332 }
 0x2f9   : > { %1294 = vadd.xlane.f32.xlu1 %v3018_v63  ;;  %1296 = vadd.xlane.f32.xlu0 %v3020_v39 }
 0x2fa   : > { %v3024_v41 = vpop.eup %2334 }
 0x2fd   : > { %1298 = vadd.xlane.f32.xlu1 %v3024_v41 }
 0x36a   : > { %v1269_v46 = vpop.xlane.xlu0 %1268 }
 0x36b   : > { %2336 = vrcp.f32 %v1269_v46 }
 0x36e   : > { %v1271_v47 = vpop.xlane.xlu1 %1270  ;;  %v1273_v48 = vpop.xlane.xlu0 %1272 }
 0x36f   : > { %2338 = vrcp.f32 %v1271_v47 }
 0x370   : > { %2340 = vrcp.f32 %v1273_v48 }
 0x372   : > { %v1275_v50 = vpop.xlane.xlu1 %1274  ;;  %v1277_v51 = vpop.xlane.xlu0 %1276 }
 0x373   : > { %2342 = vrcp.f32 %v1275_v50 }
 0x374   : > { %2344 = vrcp.f32 %v1277_v51 }
 0x375   : > { %v2337_v33 = vpop.eup %2336 }
 0x376   : > { %v1279_v53 = vpop.xlane.xlu1 %1278  ;;  %v1281_v36 = vpop.xlane.xlu0 %1280  ;;  %v1316_v55 = vmul.f32 %v2337_v33, %v2965_v14 }
 0x377   : > { %2346 = vrcp.f32 %v1279_v53 }
 0x378   : > { %2348 = vrcp.f32 %v1281_v36  ;;  %1332 = vst [vmem:[%s2652_s27] sm:$0xff] %v1316_v55 }
 0x379   : > { %v2339_v4 = vpop.eup %2338 }
 0x37a   : > { %v2341_v15 = vpop.eup %2340  ;;  %v1283_v17 = vpop.xlane.xlu1 %1282  ;;  %v1317_v18 = vmul.f32 %v2339_v4, %v2972_v21 }
 0x37b   : > { %v1285_v57 = vpop.xlane.xlu0 %1284  ;;  %v1318_v0 = vmul.f32 %v2341_v15, %v2970_v19  ;;  %2350 = vrcp.f32 %v1283_v17 }
 0x37c   : > { %2352 = vrcp.f32 %v1285_v57  ;;  %1333 = vst [vmem:[%s2652_s27 + $0x8] sm:$0xff] %v1317_v18  ;;  %v1348_v20 = vpack.c.bf16 %v1317_v18, %v1316_v55 }
 0x37d   : > { %v2343_v2 = vpop.eup %2342  ;;  %1334 = vst [vmem:[%s2652_s27 + $0x10] sm:$0xff] %v1318_v0 }
 0x37e   : > { %v2345_v14 = vpop.eup %2344  ;;  %v1319_v22 = vmul.f32 %v2343_v2, %v2978_v7  ;;  %v1287_v13 = vpop.xlane.xlu1 %1286  ;;  %2169 = vmatprep.mubr.bf16.mxu0 %v1348_v20  ;;  %v1463_v2 = vld [vmem:[#allocation2 + $0x10] sm:$0xff] }
 0x37f   : > { %v1289_v23 = vpop.xlane.xlu0 %1288  ;;  %2354 = vrcp.f32 %v1287_v13  ;;  %v1320_v25 = vmul.f32 %v2345_v14, %v2980_v26  ;;  %v1461_v14 = vld [vmem:[#allocation2] sm:$0xff]  ;;  %v1464_v13 = vld [vmem:[#allocation2 + $0x18] sm:$0xff] }
 0x380   : > { %1335 = vst [vmem:[%s2652_s27 + $0x18] sm:$0xff] %v1319_v22  ;;  %2356 = vrcp.f32 %v1289_v23  ;;  %v1349_v19 = vpack.c.bf16 %v1319_v22, %v1318_v0 }
 0x381   : > { %v2347_v21 = vpop.eup %2346  ;;  %1336 = vst [vmem:[%s2652_s27 + $0x20] sm:$0xff] %v1320_v25 }
 0x382   : > { %v2349_v31 = vpop.eup %2348  ;;  %v1291_v29 = vpop.xlane.xlu1 %1290  ;;  %2170 = vmatmul.mubr.bf16.vlgmr.msra.gmra.mrb[24].mxu0 %v1349_v19  ;;  %v1321_v40 = vmul.f32 %v2347_v21, %v2986_v12  ;;  %v1462_v19 = vld [vmem:[#allocation2 + $0x8] sm:$0xff] }
 0x383   : > { %v1293_v37 = vpop.xlane.xlu0 %1292  ;;  %2358 = vrcp.f32 %v1291_v29  ;;  %v1322_v7 = vmul.f32 %v2349_v31, %v2988_v3  ;;  %2186 = vmatpush3.bf16.msra.mxu0 %v1512_v28 }
 0x384   : > { %2360 = vrcp.f32 %v1293_v37  ;;  %1337 = vst [vmem:[%s2652_s27 + $0x28] sm:$0xff] %v1321_v40  ;;  %v1350_v26 = vpack.c.bf16 %v1321_v40, %v1320_v25 }
 0x385   : > { %v2351_v9 = vpop.eup %2350  ;;  %1338 = vst [vmem:[%s2652_s27 + $0x30] sm:$0xff] %v1322_v7 }
 0x386   : > { %v2353_v10 = vpop.eup %2352  ;;  %v1295_v42 = vpop.xlane.xlu1 %1294  ;;  %2173 = vmatprep.mubr.bf16.mxu0 %v1350_v26  ;;  %v1323_v6 = vmul.f32 %v2351_v9, %v2994_v38  ;;  %v1465_v26 = vld [vmem:[#allocation2 + $0x20] sm:$0xff] }
 0x387   : > { %v1297_v5 = vpop.xlane.xlu0 %1296  ;;  %2362 = vrcp.f32 %v1295_v42  ;;  %v1324_v12 = vmul.f32 %v2353_v10, %v2998_v56  ;;  %v1468_v10 = vld [vmem:[#allocation2 + $0x38] sm:$0xff] }
 0x388   : > { %2364 = vrcp.f32 %v1297_v5  ;;  %1339 = vst [vmem:[%s2652_s27 + $0x38] sm:$0xff] %v1323_v6  ;;  %v1351_v3 = vpack.c.bf16 %v1323_v6, %v1322_v7  ;;  %v1467_v7 = vld [vmem:[#allocation2 + $0x30] sm:$0xff]  ;;  %v1466_v6 = vld [vmem:[#allocation2 + $0x28] sm:$0xff] }
 0x389   : > { %v2355_v45 = vpop.eup %2354  ;;  %1340 = vst [vmem:[%s2652_s27 + $0x40] sm:$0xff] %v1324_v12 }
 0x38a   : > { %v2357_v11 = vpop.eup %2356  ;;  %v1299_v32 = vpop.xlane.xlu1 %1298  ;;  %2174 = vmatmul.mubr.bf16.gmra.mrb[28].mxu0 %v1351_v3  ;;  %v1325_v49 = vmul.f32 %v2355_v45, %v3006_v27 }
 0x38b   : > { %2366 = vrcp.f32 %v1299_v32  ;;  %v1326_v43 = vmul.f32 %v2357_v11, %v3008_v34 }
 0x38c   : > { %1341 = vst [vmem:[%s2652_s27 + $0x48] sm:$0xff] %v1325_v49  ;;  %v1352_v38 = vpack.c.bf16 %v1325_v49, %v1324_v12  ;;  %v1471_v49 = vld [vmem:[#allocation2 + $0x50] sm:$0xff] }
 0x38d   : > { %v2359_v52 = vpop.eup %2358  ;;  %1342 = vst [vmem:[%s2652_s27 + $0x50] sm:$0xff] %v1326_v43 }
 0x38e   : > { %v2361_v56 = vpop.eup %2360  ;;  %2177 = vmatprep.mubr.bf16.mxu0 %v1352_v38  ;;  %v1327_v54 = vmul.f32 %v2359_v52, %v3012_v35  ;;  %v1472_v52 = vld [vmem:[#allocation2 + $0x58] sm:$0xff] }
 0x38f   : > { %v1328_v60 = vmul.f32 %v2361_v56, %v3014_v24 }
 0x390   : > { %1343 = vst [vmem:[%s2652_s27 + $0x58] sm:$0xff] %v1327_v54  ;;  %v1353_v61 = vpack.c.bf16 %v1327_v54, %v1326_v43  ;;  %v1469_v43 = vld [vmem:[#allocation2 + $0x40] sm:$0xff] }
 0x391   : > { %v2363_v62 = vpop.eup %2362  ;;  %1344 = vst [vmem:[%s2652_s27 + $0x60] sm:$0xff] %v1328_v60 }
 0x392   : > { %v2365_v58 = vpop.eup %2364  ;;  %2178 = vmatmul.mubr.bf16.gmra.mrb[32].mxu0 %v1353_v61  ;;  %v1329_v1 = vmul.f32 %v2363_v62, %v3018_v63 }
 0x393   : > { %v1330_v8 = vmul.f32 %v2365_v58, %v3020_v39 }
 0x394   : > { %1345 = vst [vmem:[%s2652_s27 + $0x68] sm:$0xff] %v1329_v1  ;;  %v1354_v16 = vpack.c.bf16 %v1329_v1, %v1328_v60  ;;  %v1470_v60 = vld [vmem:[#allocation2 + $0x48] sm:$0xff] }
 0x395   : > { %v2367_v27 = vpop.eup %2366  ;;  %1346 = vst [vmem:[%s2652_s27 + $0x70] sm:$0xff] %v1330_v8 }
 0x396   : > { %2181 = vmatprep.mubr.bf16.mxu0 %v1354_v16  ;;  %v1331_v30 = vmul.f32 %v2367_v27, %v3024_v41  ;;  %v1475_v16 = vld [vmem:[#allocation2 + $0x70] sm:$0xff]  ;;  %v1473_v27 = vld [vmem:[#allocation2 + $0x60] sm:$0xff] }
 0x398   : > { %1347 = vst [vmem:[%s2652_s27 + $0x78] sm:$0xff] %v1331_v30  ;;  %v1355_v34 = vpack.c.bf16 %v1331_v30, %v1330_v8 }
 0x39a   : > { %2182 = vmatmul.mubr.bf16.gmra.mrb[36].mxu0 %v1355_v34  ;;  %v1476_v34 = vld [vmem:[#allocation2 + $0x78] sm:$0xff] }
 0x455   : > { %v2171_v59 = vpop.f32.mrb[24].mxu0 }
 0x456   : > { %v1398_v35 = vpop.f32.mrb[25].mxu0 }
 0x457   : > { %v2172_v24 = vpop.f32.mrb[26].mxu0 }
 0x458   : > { %v1478_v44 = vpack.c.bf16 %v2172_v24, %v2171_v59  ;;  %v1401_v28 = vpop.f32.mrb[27].mxu0  ;;  %v1474_v24 = vld [vmem:[#allocation2 + $0x68] sm:$0xff] }
 0x459   : > { %v1477_v46 = vpack.c.bf16 %v1401_v28, %v1398_v35 }
 0x45b   : > { %2187 = vmatprep.mubr.msk.bf16.mxu0 %vm1042_vm2, %v1477_v46 }
 0x45c   : > { %2188 = vmatmul.mubr.msk.bf16.vlgmr.msra.gmra.mrb[40].mxu0 %vm1042_vm2, %v1478_v44 }
 0x45d   : > { %v2175_v63 = vpop.f32.mrb[28].mxu0 }
 0x45e   : > { %v1414_v39 = vpop.f32.mrb[29].mxu0 }
 0x45f   : > { %v2176_v47 = vpop.f32.mrb[30].mxu0 }
 0x460   : > { %v1480_v48 = vpack.c.bf16 %v2176_v47, %v2175_v63  ;;  %v1417_v50 = vpop.f32.mrb[31].mxu0 }
 0x461   : > { %v1479_v51 = vpack.c.bf16 %v1417_v50, %v1414_v39 }
 0x463   : > { %2191 = vmatprep.mubr.msk.bf16.mxu0 %vm1042_vm2, %v1479_v51 }
 0x464   : > { %2192 = vmatmul.mubr.msk.bf16.gmra.mrb[44].mxu0 %vm1042_vm2, %v1480_v48  ;;  %v1978_v48 = vld [vmem:[%s3192_s8] ss:$0 sm:$0xff] (!%p1977_p1) }
 0x465   : > { %v2179_v41 = vpop.f32.mrb[32].mxu0 }
 0x466   : > { %v1430_v33 = vpop.f32.mrb[33].mxu0 }
 0x467   : > { %v2180_v53 = vpop.f32.mrb[34].mxu0 }
 0x468   : > { %v1482_v36 = vpack.c.bf16 %v2180_v53, %v2179_v41  ;;  %v1433_v55 = vpop.f32.mrb[35].mxu0 }
 0x469   : > { %v1481_v4 = vpack.c.bf16 %v1433_v55, %v1430_v33 }
 0x46b   : > { %2195 = vmatprep.mubr.msk.bf16.mxu0 %vm1042_vm2, %v1481_v4 }
 0x46c   : > { %2196 = vmatmul.mubr.msk.bf16.gmra.mrb[48].mxu0 %vm1042_vm2, %v1482_v36 }
 0x46d   : > { %v2183_v15 = vpop.f32.mrb[36].mxu0 }
 0x46e   : > { %v1446_v17 = vpop.f32.mrb[37].mxu0 }
 0x46f   : > { %v2184_v57 = vpop.f32.mrb[38].mxu0 }
 0x470   : > { %v1484_v18 = vpack.c.bf16 %v2184_v57, %v2183_v15  ;;  %v1449_v0 = vpop.f32.mrb[39].mxu0 }
 0x471   : > { %v1483_v20 = vpack.c.bf16 %v1449_v0, %v1446_v17 }
 0x473   : > { %2199 = vmatprep.mubr.msk.bf16.mxu0 %vm1042_vm2, %v1483_v20 }
 0x474   : > { %2200 = vmatmul.mubr.msk.bf16.gmra.mrb[52].mxu0 %vm1042_vm2, %v1484_v18 }
 0x52f   : > { %v2189_v22 = vpop.f32.mrb[40].mxu0 }
 0x530   : > { %v1613_v23 = vadd.f32 %v2189_v22, %v1463_v2  ;;  %v1548_v25 = vpop.f32.mrb[41].mxu0 }
 0x531   : > { %v1611_v21 = vadd.f32 %v1548_v25, %v1461_v14  ;;  %v2190_v31 = vpop.f32.mrb[42].mxu0 }
 0x532   : > { %1629 = vst.msk [vmem:[#allocation2 + $0x10] sm:$0xff] %vm632_vm1, %v1613_v23  ;;  %v1614_v29 = vadd.f32 %v2190_v31, %v1464_v13  ;;  %v1551_v37 = vpop.f32.mrb[43].mxu0 }
 0x533   : > { %1627 = vst.msk [vmem:[#allocation2] sm:$0xff] %vm632_vm1, %v1611_v21  ;;  %v1612_v40 = vadd.f32 %v1551_v37, %v1462_v19 }
 0x534   : > { %1630 = vst.msk [vmem:[#allocation2 + $0x18] sm:$0xff] %vm632_vm1, %v1614_v29 }
 0x535   : > { %1628 = vst.msk [vmem:[#allocation2 + $0x8] sm:$0xff] %vm632_vm1, %v1612_v40 }
 0x537   : > { %v2193_v9 = vpop.f32.mrb[44].mxu0 }
 0x538   : > { %v1617_v42 = vadd.f32 %v2193_v9, %v1467_v7  ;;  %v1564_v5 = vpop.f32.mrb[45].mxu0 }
 0x539   : > { %v1615_v12 = vadd.f32 %v1564_v5, %v1465_v26  ;;  %v2194_v3 = vpop.f32.mrb[46].mxu0  ;;  %v1649_v33 = vld [vmem:[#allocation2 + $0x10] sm:$0xff] (!%p1977_p1) }
 0x53a   : > { %1633 = vst.msk [vmem:[#allocation2 + $0x30] sm:$0xff] %vm632_vm1, %v1617_v42  ;;  %v1618_v45 = vadd.f32 %v2194_v3, %v1468_v10  ;;  %v1567_v11 = vpop.f32.mrb[47].mxu0  ;;  %v1647_v47 = vld [vmem:[#allocation2] sm:$0xff] (!%p1977_p1)  ;;  %v1672_v55 = vadd.f32 (!%p1977_p1), %v1978_v48, %v1649_v33 }
 0x53b   : > { %1631 = vst.msk [vmem:[#allocation2 + $0x20] sm:$0xff] %vm632_vm1, %v1615_v12  ;;  %v1616_v32 = vadd.f32 %v1567_v11, %v1466_v6  ;;  %v1670_v51 = vadd.f32 (!%p1977_p1), %v1978_v48, %v1647_v47  ;;  %v1650_v53 = vld [vmem:[#allocation2 + $0x18] sm:$0xff] (!%p1977_p1) }
 0x53c   : > { %1634 = vst.msk [vmem:[#allocation2 + $0x38] sm:$0xff] %vm632_vm1, %v1618_v45  ;;  %v1648_v50 = vld [vmem:[#allocation2 + $0x8] sm:$0xff] (!%p1977_p1)  ;;  %v1673_v4 = vadd.f32 (!%p1977_p1), %v1978_v48, %v1650_v53  ;;  %1688 = vst.msk [vmem:[%s2645_s11 + $0x10] sm:$0xff] (!%p1977_p1), %vm632_vm1, %v1672_v55 }
 0x53d   : > { %1632 = vst.msk [vmem:[#allocation2 + $0x28] sm:$0xff] %vm632_vm1, %v1616_v32  ;;  %v1671_v41 = vadd.f32 (!%p1977_p1), %v1978_v48, %v1648_v50  ;;  %1686 = vst.msk [vmem:[%s2645_s11] sm:$0xff] (!%p1977_p1), %vm632_vm1, %v1670_v51 }
 0x53e   : > { %1689 = vst.msk [vmem:[%s2645_s11 + $0x18] sm:$0xff] (!%p1977_p1), %vm632_vm1, %v1673_v4 }
 0x53f   : > { %v2197_v38 = vpop.f32.mrb[48].mxu0  ;;  %1687 = vst.msk [vmem:[%s2645_s11 + $0x8] sm:$0xff] (!%p1977_p1), %vm632_vm1, %v1671_v41 }
 0x540   : > { %v1621_v56 = vadd.f32 %v2197_v38, %v1471_v49  ;;  %v1580_v54 = vpop.f32.mrb[49].mxu0 }
 0x541   : > { %v1619_v61 = vadd.f32 %v1580_v54, %v1469_v43  ;;  %v2198_v62 = vpop.f32.mrb[50].mxu0  ;;  %v1653_v57 = vld [vmem:[#allocation2 + $0x30] sm:$0xff] (!%p1977_p1) }
 0x542   : > { %1637 = vst.msk [vmem:[#allocation2 + $0x50] sm:$0xff] %vm632_vm1, %v1621_v56  ;;  %v1622_v58 = vadd.f32 %v2198_v62, %v1472_v52  ;;  %v1583_v1 = vpop.f32.mrb[51].mxu0  ;;  %v1651_v36 = vld [vmem:[#allocation2 + $0x20] sm:$0xff] (!%p1977_p1)  ;;  %v1676_v20 = vadd.f32 (!%p1977_p1), %v1978_v48, %v1653_v57 }
 0x543   : > { %1635 = vst.msk [vmem:[#allocation2 + $0x40] sm:$0xff] %vm632_vm1, %v1619_v61  ;;  %v1620_v8 = vadd.f32 %v1583_v1, %v1470_v60  ;;  %v1674_v15 = vadd.f32 (!%p1977_p1), %v1978_v48, %v1651_v36  ;;  %v1654_v18 = vld [vmem:[#allocation2 + $0x38] sm:$0xff] (!%p1977_p1) }
 0x544   : > { %1638 = vst.msk [vmem:[#allocation2 + $0x58] sm:$0xff] %vm632_vm1, %v1622_v58  ;;  %v1652_v17 = vld [vmem:[#allocation2 + $0x28] sm:$0xff] (!%p1977_p1)  ;;  %v1677_v2 = vadd.f32 (!%p1977_p1), %v1978_v48, %v1654_v18  ;;  %1692 = vst.msk [vmem:[%s2645_s11 + $0x30] sm:$0xff] (!%p1977_p1), %vm632_vm1, %v1676_v20 }
 0x545   : > { %1636 = vst.msk [vmem:[#allocation2 + $0x48] sm:$0xff] %vm632_vm1, %v1620_v8  ;;  %v1675_v0 = vadd.f32 (!%p1977_p1), %v1978_v48, %v1652_v17  ;;  %1690 = vst.msk [vmem:[%s2645_s11 + $0x20] sm:$0xff] (!%p1977_p1), %vm632_vm1, %v1674_v15 }
 0x546   : > { %1693 = vst.msk [vmem:[%s2645_s11 + $0x38] sm:$0xff] (!%p1977_p1), %vm632_vm1, %v1677_v2 }
 0x547   : > { %v2201_v30 = vpop.f32.mrb[52].mxu0  ;;  %1646 = sbr.rel (%p1977_p1) target bundleno = 1368 (0x558), region = 68  ;;  %1691 = vst.msk [vmem:[%s2645_s11 + $0x28] sm:$0xff] (!%p1977_p1), %vm632_vm1, %v1675_v0 }
 0x548   : > { %v1625_v59 = vadd.f32 %v2201_v30, %v1475_v16  ;;  %v1596_v35 = vpop.f32.mrb[53].mxu0 }
 0x549   : > { %v1623_v44 = vadd.f32 %v1596_v35, %v1473_v27  ;;  %v2202_v28 = vpop.f32.mrb[54].mxu0  ;;  %v1657_v13 = vld [vmem:[#allocation2 + $0x50] sm:$0xff] (!%p1977_p1) }
 0x54a   : > { %1641 = vst.msk [vmem:[#allocation2 + $0x70] sm:$0xff] %vm632_vm1, %v1625_v59  ;;  %v1626_v46 = vadd.f32 %v2202_v28, %v1476_v34  ;;  %v1599_v63 = vpop.f32.mrb[55].mxu0  ;;  %v1655_v14 = vld [vmem:[#allocation2 + $0x40] sm:$0xff] (!%p1977_p1)  ;;  %v1680_v19 = vadd.f32 (!%p1977_p1), %v1978_v48, %v1657_v13 }
 0x54b   : > { %1639 = vst.msk [vmem:[#allocation2 + $0x60] sm:$0xff] %vm632_vm1, %v1623_v44  ;;  %v1624_v39 = vadd.f32 %v1599_v63, %v1474_v24  ;;  %v1678_v23 = vadd.f32 (!%p1977_p1), %v1978_v48, %v1655_v14  ;;  %v1658_v21 = vld [vmem:[#allocation2 + $0x58] sm:$0xff] (!%p1977_p1) }
 0x54c   : > { %1642 = vst.msk [vmem:[#allocation2 + $0x78] sm:$0xff] %vm632_vm1, %v1626_v46  ;;  %v1656_v22 = vld [vmem:[#allocation2 + $0x48] sm:$0xff] (!%p1977_p1)  ;;  %v1681_v37 = vadd.f32 (!%p1977_p1), %v1978_v48, %v1658_v21  ;;  %1696 = vst.msk [vmem:[%s2645_s11 + $0x50] sm:$0xff] (!%p1977_p1), %vm632_vm1, %v1680_v19 }
 0x54d   : > { %1640 = vst.msk [vmem:[#allocation2 + $0x68] sm:$0xff] %vm632_vm1, %v1624_v39  ;;  %v1679_v25 = vadd.f32 (!%p1977_p1), %v1978_v48, %v1656_v22  ;;  %1694 = vst.msk [vmem:[%s2645_s11 + $0x40] sm:$0xff] (!%p1977_p1), %vm632_vm1, %v1678_v23 }
 0x54e   : > { %1697 = vst.msk [vmem:[%s2645_s11 + $0x58] sm:$0xff] %vm632_vm1, %v1681_v37 }
 0x54f   : > { %1695 = vst.msk [vmem:[%s2645_s11 + $0x48] sm:$0xff] %vm632_vm1, %v1679_v25 }
 0x551   : > { %v1661_v26 = vld [vmem:[#allocation2 + $0x70] sm:$0xff] }
 0x552   : > { %v1659_v31 = vld [vmem:[#allocation2 + $0x60] sm:$0xff]  ;;  %v1684_v10 = vadd.f32 %v1978_v48, %v1661_v26 }
 0x553   : > { %v1682_v40 = vadd.f32 %v1978_v48, %v1659_v31  ;;  %v1662_v9 = vld [vmem:[#allocation2 + $0x78] sm:$0xff] }
 0x554   : > { %v1660_v29 = vld [vmem:[#allocation2 + $0x68] sm:$0xff]  ;;  %v1685_v42 = vadd.f32 %v1978_v48, %v1662_v9  ;;  %1700 = vst.msk [vmem:[%s2645_s11 + $0x70] sm:$0xff] %vm632_vm1, %v1684_v10 }
 0x555   : > { %v1683_v7 = vadd.f32 %v1978_v48, %v1660_v29  ;;  %1698 = vst.msk [vmem:[%s2645_s11 + $0x60] sm:$0xff] %vm632_vm1, %v1682_v40 }
 0x556   : > { %1701 = vst.msk [vmem:[%s2645_s11 + $0x78] sm:$0xff] %vm632_vm1, %v1685_v42 }
 0x557   : > { %1699 = vst.msk [vmem:[%s2645_s11 + $0x68] sm:$0xff] %vm632_vm1, %v1683_v7 }
 0x558 PF: > { %s3233_s21 = sld [smem:[#allocation9_spill]]  ;;  %s1980_s26 = sshll.u32 %s2446_s20, 4 }
 0x559   : > { %s3234_s0 = sld [smem:[#allocation7_spill]]  ;;  %s1726_s29 = sshll.u32 %s2652_s27, 4  ;;  %s3123_s29 = int_to_ptr.vmem [resolvable:$true] %s1726_s29 }
 0x55a   : > { %s3236_s17 = sld [smem:[#allocation21_spill]]  ;;  %s2368_s18 = scalar_lea.vmem %s3123_s29, 2048 }
 0x55b   : > { %p2369_p2 = scmp.ne.s32.totalorder %s3123_s29, %s2368_s18  ;;  %s2465_s20 = smov [#allocation3]  }
 0x55c   : > { %s2372_s27 = sshll.u32 %s2465_s20, 4  ;;  %s2373_s27 = int_to_ptr.vmem [resolvable:$false] %s2372_s27 }
 0x55d   : > { %p2370_p4 = pnand %p2369_p2, %p2579_p3  ;;  %s2374_s22 = scalar_lea.vmem %s2373_s27, 4096 }
 0x55e   : > { %s1981_s13 = sshll.u32 %s3233_s21, 6  ;;  %p2375_p6 = scmp.lt.s32.totalorder %s3123_s29, %s2373_s27 }
 0x55f   : > { %s1723_s14 = sadd.s32 %s1981_s13, %s1980_s26  ;;  %s3238_s30 = sand.u32 1, %s3234_s0  }
 0x560   : > { %s1982_s15 = sshll.u32 %s1723_s14, 7  ;;  %s3237_s12 = smov %s3236_s17 }
 0x561   : > { %s3128_s11 = scalar_lea.hbm %s3236_s17, %s1982_s15  ;;  %s3132_s3 = scalar_lea.sflag [#allocation4], %s3238_s30 }
 0x562   : > { %p2371_p5 = pneg %p2370_p4  ;;  %p2376_p7 = scmp.lt.s32.totalorder %s2374_s22, %s2368_s18 }
 0x564   : > { %p2377_p9 = por %p2376_p7, %p2375_p6 }
 0x566   : > { %p2378_p10 = pnand %p2377_p9, %p2371_p5 }
 0x568   : > { %2381 = shalt.err (!%p2378_p10)
}
 0x569   : > { %s2382_s23 = scalar_lea.hbm %s3128_s11, 2048  ;;  %s2386_s28 = scalar_lea.hbm %s3237_s12, 16384 }
 0x56a   : > { %p2383_p11 = scmp.ne.s32.totalorder %s3128_s11, %s2382_s23  ;;  %p2387_p0 = scmp.lt.u32.totalorder %s3128_s11, %s3237_s12 }
 0x56b   : > { %p2388_p1 = scmp.lt.u32.totalorder %s2386_s28, %s2382_s23  ;;  %p2390_p4 = scmp.lt.u32.totalorder %s2382_s23, %s3128_s11 }
 0x56c   : > { %p2384_p12 = pnand %p2383_p11, %p2579_p3 }
 0x56d   : > { %p2389_p2 = por %p2388_p1, %p2387_p0 }
 0x56e   : > { %p2385_p13 = pneg %p2384_p12 }
 0x56f   : > { %p2391_p5 = por %p2390_p4, %p2389_p2 }
 0x571   : > { %p2392_p6 = pnand %p2391_p5, %p2385_p13 }
 0x573   : > { %2395 = shalt.err (!%p2392_p6)
}
 0x574   : > { %s2466_s26 = smov 128   ;;  %s2467_s13 = smov 8  }
 0x575   : > { %2216 = dma.vmem_to_hbm [thread:$0]  (%p2579_p3), %s3123_s29, 2048, %s3128_s11, %s3132_s3, %s2466_s26, %s2466_s26, %s2467_s13  }
 0x576 PF: > { %s3239_s14 = sld [smem:[#allocation12_spill]]  ;;  %s3240_s15 = sld [smem:[#allocation6_spill]] }
 0x57c   : > { %p2222_p7 = scmp.ge.s32.totalorder %s3239_s14, 2  ;;  %s1749_s16 = sand.u32 1, %s3240_s15  }
 0x57d   : > { %s1750_s17 = scalar_lea.sflag [#allocation4], %s1749_s16 }
 0x57e   : > { %p2219_p9 = pnand %p2222_p7, %p2588_p8 }
 0x580   : > { %2429 = dma.done.wait (!%p2219_p9), %s1750_s17, 2048  }
 0x581   : > { %2431 = vsyncadd (!%p2219_p9), %s1750_s17, 4294965248  ;;  %s25_s24 = sadd.s32 1, %s3239_s14   ;;  %s3242_s17 = sld [smem:[#allocation7_spill]] }
 0x582   : > { %p22_p10 = scmp.ge.s32.totalorder %s25_s24, 10   ;;  %s3243_s18 = sld [smem:[#allocation8_spill]] }
 0x583   : > { %s3244_s19 = sld [smem:[#allocation17_spill]]  ;;  %s3245_s20 = sld [smem:[#allocation10_spill]] }
 0x584   : > { %s3246_s21 = sld [smem:[#allocation11_spill]]  ;;  %s3247_s22 = sld [smem:[#allocation13_spill]] }
 0x585   : > { %s3248_s23 = sld [smem:[#allocation15_spill]]  ;;  %24 = sbr.rel (!%p22_p10) target bundleno = 10 (0xa), region = 136 }
 0x58c   :  { %1755 = vsyncpa [#allocation4], 1 }
 0x58d   :  { %1757 = vsyncpa [#allocation4 + $0x1], 1 }

</bundles_post_ra>
